<compile_context>
chip_gen: v5e
topology: v5e:2x2
jax: 0.10.0
libtpu: 0.0.40
codegen_flags: <defaults>
</compile_context>

<pallas_src>
import functools

import numpy as np
import jax
import jax.numpy as jnp
from jax import lax
from jax.experimental import pallas as pl
from jax.experimental.pallas import tpu as pltpu  # noqa: F401  (kept for TPU backend parity)


# ----------------------------- config ---------------------------------------
class Config:
    num_clinical_features = 16
    ma_channels = 32
    ma_output_features_before_fusion = 32
    img_size = 16
    img_channels = 3
    patch_size = 8
    vit_dim = 32
    vit_heads = 2
    vit_mlp_dim = 64
    vit_output_features_before_fusion = 32
    fusion_hidden_dims = [64]
    fusion_dropout = 0.1          # eval mode -> identity
    num_classes = 4
    training_mode = "full"


config = Config()

_SEQ_PAD = 8      # ViT sequence length padded to the 8-sublane boundary (T = 5 -> 8)


# --------------------------- in-kernel helpers -------------------------------
def _ln(x, g, b, eps=1e-5):
    """Row-wise LayerNorm on a 2-D (rows, D) array held in vregs."""
    mu = jnp.mean(x, axis=-1, keepdims=True)
    var = jnp.mean((x - mu) * (x - mu), axis=-1, keepdims=True)
    return (x - mu) * lax.rsqrt(var + eps) * g + b


# ------------------------------ fused kernel ---------------------------------
def _mmdf_kernel(
    # clinical branch
    xc_ref, convM_ref, convb_ref, gapG_ref, caw_ref, cab_ref, clinw_ref, clinb_ref,
    # image branch (single-block ViT)
    xp_ref, patchw_ref, sel_ref, base_ref,
    ln1g_ref, ln1b_ref, qkvw_ref, qkvb_ref, projw_ref, projb_ref,
    ln2g_ref, ln2b_ref, m1w_ref, m1b_ref, m2w_ref, m2b_ref,
    lnfg_ref, lnfb_ref, clssel_ref, mask_ref, imgw_ref, imgb_ref,
    # fusion head
    f1a_ref, f1b_ref, fb1_ref, f2w_ref, fb2_ref,
    # outputs
    logits_ref, attn_ref,
    *, B, TP, Hd, Dh):
    D = Hd * Dh
    nrow = B * TP

    # ---------------- clinical branch (MA1DCNN-style) ----------------
    # Conv1d(k=3, pad=1) folded into a single (F, F*C) matmul; ReLU; GAP via a
    # constant (F*C, C) averaging matmul; per-channel sigmoid attention; aux head.
    xc = xc_ref[...]                                                        # (B, F)
    h = jnp.dot(xc, convM_ref[...], preferred_element_type=jnp.float32)
    h = jnp.maximum(h + convb_ref[...], 0.0)                                # (B, F*C)
    gap = jnp.dot(h, gapG_ref[...], preferred_element_type=jnp.float32)     # (B, C)
    att = jax.nn.sigmoid(
        jnp.dot(gap, caw_ref[...], preferred_element_type=jnp.float32) + cab_ref[...])
    feat1 = gap * att                                                       # mean(h*att) == gap*att
    clin_logits = (jnp.dot(feat1, clinw_ref[...],
                           preferred_element_type=jnp.float32) + clinb_ref[...])

    # ---------------- image branch (single-block pre-LN ViT) ----------------
    # Patch embedding + constant scatter into padded token slots + additive base
    # (cls token, positional embedding, patch bias folded in; pad rows stay 0).
    pe = jnp.dot(xp_ref[...], patchw_ref[...],
                 preferred_element_type=jnp.float32)                        # (B*N, D)
    base = jnp.concatenate([base_ref[...]] * B, axis=0)                     # (B*TP, D)
    x = jnp.dot(sel_ref[...], pe, preferred_element_type=jnp.float32) + base

    # ---- MHSA (pre-LN); all batches & heads in 2 MXU matmuls via sublane stacking.
    hx = _ln(x, ln1g_ref[...], ln1b_ref[...])
    qkv = (jnp.dot(hx, qkvw_ref[...], preferred_element_type=jnp.float32)
           + qkvb_ref[...])                                                 # (B*TP, 3D)
    q = qkv[:, 0:D]                 # 1/sqrt(Dh) already folded into the Q projection
    k = qkv[:, D:2 * D]
    v = qkv[:, 2 * D:3 * D]
    qs = jnp.concatenate([q[:, hd * Dh:(hd + 1) * Dh] for hd in range(Hd)], axis=0)
    ks = jnp.concatenate([k[:, hd * Dh:(hd + 1) * Dh] for hd in range(Hd)], axis=0)
    vs = jnp.concatenate([v[:, hd * Dh:(hd + 1) * Dh] for hd in range(Hd)], axis=0)
    s = jnp.dot(qs, ks.T, preferred_element_type=jnp.float32)               # (Hd*B*TP,)^2
    s = s + mask_ref[...]           # block-diagonal (per batch*head) + padded-key mask
    s = s - jnp.max(s, axis=-1, keepdims=True)
    e = jnp.exp(s)
    p_attn = e * pl.reciprocal(jnp.sum(e, axis=-1, keepdims=True), approx=True)
    o_s = jnp.dot(p_attn, vs, preferred_element_type=jnp.float32)           # (Hd*B*TP, Dh)
    o = jnp.concatenate([o_s[hd * nrow:(hd + 1) * nrow, :] for hd in range(Hd)],
                        axis=-1)                                            # (B*TP, D)
    x = x + (jnp.dot(o, projw_ref[...], preferred_element_type=jnp.float32)
             + projb_ref[...])

    # ---- MLP (pre-LN) + residual ----
    hx = _ln(x, ln2g_ref[...], ln2b_ref[...])
    m = jnp.maximum(jnp.dot(hx, m1w_ref[...],
                            preferred_element_type=jnp.float32) + m1b_ref[...], 0.0)
    x = x + (jnp.dot(m, m2w_ref[...], preferred_element_type=jnp.float32)
             + m2b_ref[...])

    # ---- final LN, CLS extraction via constant selector matmul, image aux head ----
    xf = _ln(x, lnfg_ref[...], lnfb_ref[...])
    feat2 = jnp.dot(clssel_ref[...], xf, preferred_element_type=jnp.float32)  # (B, D)
    img_logits = (jnp.dot(feat2, imgw_ref[...],
                          preferred_element_type=jnp.float32) + imgb_ref[...])

    # per-(batch, head) attention maps = diagonal (TP, TP) blocks of p_attn
    for b in range(B):
        for hd in range(Hd):
            g = hd * B + b
            attn_ref[b * Hd + hd] = p_attn[g * TP:(g + 1) * TP, g * TP:(g + 1) * TP]

    # ---------------- fusion head ----------------
    # concat([feat1, feat2]) @ W1 == feat1 @ W1[:C] + feat2 @ W1[C:]  (concat avoided)
    fh = (jnp.dot(feat1, f1a_ref[...], preferred_element_type=jnp.float32)
          + jnp.dot(feat2, f1b_ref[...], preferred_element_type=jnp.float32)
          + fb1_ref[...])
    fh = jnp.maximum(fh, 0.0)        # Dropout is identity in eval mode.
    main_logits = (jnp.dot(fh, f2w_ref[...], preferred_element_type=jnp.float32)
                   + fb2_ref[...])

    # single packed logits store: [main | image_aux | clinical_aux]
    logits_ref[...] = jnp.concatenate([main_logits, img_logits, clin_logits], axis=-1)


# ------------------------------ wrapper ---------------------------------------
def mmdf_fused(p, clinical, mri):
    c = config
    B = clinical.shape[0]
    F = c.num_clinical_features
    C = c.ma_channels
    D = c.vit_dim
    Hd = c.vit_heads
    Dh = D // Hd
    ps = c.patch_size
    gh = c.img_size // ps
    N = gh * gh
    T = N + 1
    TP = _SEQ_PAD
    Pd = c.img_channels * ps * ps
    ncls = c.num_classes

    # Patchify (pure layout: reshape/transpose only).
    xp = mri.astype(jnp.float32).reshape(B, c.img_channels, gh, ps, gh, ps)
    xp = jnp.transpose(xp, (0, 2, 4, 1, 3, 5)).reshape(B * N, Pd)

    # Trace-time constants (numpy -> baked into the executable, zero runtime ops).
    sel = np.zeros((B * TP, B * N), np.float32)          # patch -> padded-token scatter
    for b in range(B):
        for j in range(N):
            sel[b * TP + 1 + j, b * N + j] = 1.0
    cls_sel = np.zeros((B, B * TP), np.float32)          # CLS row selector
    for b in range(B):
        cls_sel[b, b * TP] = 1.0
    G = B * Hd
    mask = np.full((G * TP, G * TP), -1e30, np.float32)  # block-diag + padded-key mask
    for g in range(G):
        mask[g * TP:(g + 1) * TP, g * TP:g * TP + T] = 0.0
    gapG = np.tile(np.eye(C, dtype=np.float32), (F, 1)) / float(F)   # GAP over length

    kernel = functools.partial(_mmdf_kernel, B=B, TP=TP, Hd=Hd, Dh=Dh)
    logits_slab, attn = pl.pallas_call(
        kernel,
        out_shape=(jax.ShapeDtypeStruct((B, 3 * ncls), jnp.float32),
                   jax.ShapeDtypeStruct((B * Hd, TP, TP), jnp.float32)),
    )(clinical.astype(jnp.float32), p["conv_M"], p["conv_bT"], gapG,
      p["ca_w"], p["ca_b"], p["clin_aux_w"], p["clin_aux_b"],
      xp, p["patch_w"], sel, p["base"],
      p["ln1_g"], p["ln1_b"], p["qkv_w"], p["qkv_b"], p["proj_w"], p["proj_b"],
      p["ln2_g"], p["ln2_b"], p["mlp1_w"], p["mlp1_b"], p["mlp2_w"], p["mlp2_b"],
      p["lnf_g"], p["lnf_b"], cls_sel, mask, p["img_aux_w"], p["img_aux_b"],
      p["fus1_wa"], p["fus1_wb"], p["fus1_b"], p["fus2_w"], p["fus2_b"])

    main_logits = logits_slab[:, 0:ncls]
    img_logits = logits_slab[:, ncls:2 * ncls]
    clin_logits = logits_slab[:, 2 * ncls:3 * ncls]
    attn = attn.reshape(B, Hd, TP, TP)[:, :, :T, :T]
    return main_logits, img_logits, clin_logits, attn


# --------------------------- parameters ---------------------------------------
def _dense_init(key, fan_in, fan_out, scale=0.02):
    return jax.random.normal(key, (fan_in, fan_out), jnp.float32) * scale


def init_params(key):
    c = config
    F = c.num_clinical_features
    C = c.ma_channels
    D = c.vit_dim
    Dh = D // c.vit_heads
    ps = c.patch_size
    gh = c.img_size // ps
    N = gh * gh
    T = N + 1
    TP = _SEQ_PAD
    Pd = c.img_channels * ps * ps
    mlp = c.vit_mlp_dim
    ncls = c.num_classes
    Hf = c.fusion_hidden_dims[0]
    ks = iter(jax.random.split(key, 32))
    p = {}

    # ---- MA1DCNN (clinical): Conv1d(1->C, k=3, pad=1) + channel attention ----
    conv_w = _dense_init(next(ks), 3, C)                 # (tap, channel)
    conv_b = jnp.zeros((C,), jnp.float32)
    # Fold the conv (with zero padding) into one (F, F*C) matrix:
    #   h[b, i*C + c] = sum_t x[b, i + t - 1] * conv_w[t, c]
    shift = [np.eye(F, k=1 - t, dtype=np.float32) for t in range(3)]
    convM = sum(shift[t][:, :, None] * conv_w[t][None, None, :] for t in range(3))
    p["conv_M"] = convM.reshape(F, F * C)
    p["conv_bT"] = jnp.tile(conv_b, (F,)).reshape(1, F * C)
    p["ca_w"] = _dense_init(next(ks), C, C)
    p["ca_b"] = jnp.zeros((1, C), jnp.float32)

    # ---- MRI_ViT (image): patch embed + cls/pos + one pre-LN transformer block ----
    p["patch_w"] = _dense_init(next(ks), Pd, D)
    patch_b = jnp.zeros((D,), jnp.float32)
    cls = jax.random.normal(next(ks), (1, D), jnp.float32) * 0.02
    pos = jax.random.normal(next(ks), (T, D), jnp.float32) * 0.02
    # cls token, positional embedding and patch bias folded into one additive slab;
    # rows T..TP-1 are the padded (attention-masked) token slots.
    p["base"] = jnp.concatenate(
        [cls + pos[0:1], pos[1:T] + patch_b[None, :],
         jnp.zeros((TP - T, D), jnp.float32)], axis=0)
    p["ln1_g"] = jnp.ones((1, D), jnp.float32)
    p["ln1_b"] = jnp.zeros((1, D), jnp.float32)
    qkv_w = _dense_init(next(ks), D, 3 * D)
    qkv_b = jnp.zeros((3 * D,), jnp.float32)
    scale = Dh ** -0.5
    # fold the 1/sqrt(Dh) attention scale into the Q projection
    p["qkv_w"] = jnp.concatenate([qkv_w[:, :D] * scale, qkv_w[:, D:]], axis=1)
    p["qkv_b"] = jnp.concatenate([qkv_b[:D] * scale, qkv_b[D:]]).reshape(1, 3 * D)
    p["proj_w"] = _dense_init(next(ks), D, D)
    p["proj_b"] = jnp.zeros((1, D), jnp.float32)
    p["ln2_g"] = jnp.ones((1, D), jnp.float32)
    p["ln2_b"] = jnp.zeros((1, D), jnp.float32)
    p["mlp1_w"] = _dense_init(next(ks), D, mlp)
    p["mlp1_b"] = jnp.zeros((1, mlp), jnp.float32)
    p["mlp2_w"] = _dense_init(next(ks), mlp, D)
    p["mlp2_b"] = jnp.zeros((1, D), jnp.float32)
    p["lnf_g"] = jnp.ones((1, D), jnp.float32)
    p["lnf_b"] = jnp.zeros((1, D), jnp.float32)

    # ---- heads ----
    fin1 = c.ma_output_features_before_fusion
    fus1_w = _dense_init(next(ks), fin1 + c.vit_output_features_before_fusion, Hf)
    p["fus1_wa"] = fus1_w[:fin1]
    p["fus1_wb"] = fus1_w[fin1:]
    p["fus1_b"] = jnp.zeros((1, Hf), jnp.float32)
    p["fus2_w"] = _dense_init(next(ks), Hf, ncls)
    p["fus2_b"] = jnp.zeros((1, ncls), jnp.float32)
    p["img_aux_w"] = _dense_init(next(ks), c.vit_output_features_before_fusion, ncls)
    p["img_aux_b"] = jnp.zeros((1, ncls), jnp.float32)
    p["clin_aux_w"] = _dense_init(next(ks), c.ma_output_features_before_fusion, ncls)
    p["clin_aux_b"] = jnp.zeros((1, ncls), jnp.float32)
    return p


# ------------------------------- MMDF ------------------------------------------
def mmdf_forward(p, clinical_data, mri_data):
    if clinical_data is None and mri_data is None:
        return None, None, None, None
    c = config
    B = clinical_data.shape[0] if clinical_data is not None else mri_data.shape[0]
    # TODO(synk): missing-modality paths reuse the fused kernel with a zero placeholder
    # for the absent branch; the corresponding outputs are discarded (returned as None).
    clin_in = (clinical_data if clinical_data is not None
               else jnp.zeros((B, c.num_clinical_features), jnp.float32))
    mri_in = (mri_data if mri_data is not None
              else jnp.zeros((B, c.img_channels, c.img_size, c.img_size), jnp.float32))
    main_logits, img_logits, clin_logits, attn = mmdf_fused(p, clin_in, mri_in)
    if clinical_data is None:
        main_logits, clin_logits = None, None
    if mri_data is None:
        main_logits, img_logits, attn = None, None, None
    return main_logits, img_logits, clin_logits, attn


# ------------------------------- main -------------------------------------------
if __name__ == "__main__":
    key = jax.random.PRNGKey(0)
    k_param, k_clin, k_mri = jax.random.split(key, 3)

    params = init_params(k_param)
    B = 2
    clinical = jax.random.normal(k_clin, (B, config.num_clinical_features), jnp.float32)
    mri = jax.random.normal(
        k_mri, (B, config.img_channels, config.img_size, config.img_size), jnp.float32)

    fwd = jax.jit(mmdf_forward)
    main_logits, img_logits, clin_logits, attn = fwd(params, clinical, mri)
    jax.block_until_ready((main_logits, img_logits, clin_logits, attn))

    T = (config.img_size // config.patch_size) ** 2 + 1
    assert main_logits.shape == (B, config.num_classes)
    assert img_logits.shape == (B, config.num_classes)
    assert clin_logits.shape == (B, config.num_classes)
    assert attn.shape == (B, config.vit_heads, T, T)
    print("KERNEL_OK")
</pallas_src>

<mosaic_0001>
module attributes {stable_mosaic.version = 11 : i64} {
  func.func @_mmdf_kernel(%arg0: memref<2x16xf32, #tpu.memory_space<vmem>>, %arg1: memref<16x512xf32, #tpu.memory_space<vmem>>, %arg2: memref<1x512xf32, #tpu.memory_space<vmem>>, %arg3: memref<512x32xf32, #tpu.memory_space<vmem>>, %arg4: memref<32x32xf32, #tpu.memory_space<vmem>>, %arg5: memref<1x32xf32, #tpu.memory_space<vmem>>, %arg6: memref<32x4xf32, #tpu.memory_space<vmem>>, %arg7: memref<1x4xf32, #tpu.memory_space<vmem>>, %arg8: memref<8x192xf32, #tpu.memory_space<vmem>>, %arg9: memref<192x32xf32, #tpu.memory_space<vmem>>, %arg10: memref<16x8xf32, #tpu.memory_space<vmem>>, %arg11: memref<8x32xf32, #tpu.memory_space<vmem>>, %arg12: memref<1x32xf32, #tpu.memory_space<vmem>>, %arg13: memref<1x32xf32, #tpu.memory_space<vmem>>, %arg14: memref<32x96xf32, #tpu.memory_space<vmem>>, %arg15: memref<1x96xf32, #tpu.memory_space<vmem>>, %arg16: memref<32x32xf32, #tpu.memory_space<vmem>>, %arg17: memref<1x32xf32, #tpu.memory_space<vmem>>, %arg18: memref<1x32xf32, #tpu.memory_space<vmem>>, %arg19: memref<1x32xf32, #tpu.memory_space<vmem>>, %arg20: memref<32x64xf32, #tpu.memory_space<vmem>>, %arg21: memref<1x64xf32, #tpu.memory_space<vmem>>, %arg22: memref<64x32xf32, #tpu.memory_space<vmem>>, %arg23: memref<1x32xf32, #tpu.memory_space<vmem>>, %arg24: memref<1x32xf32, #tpu.memory_space<vmem>>, %arg25: memref<1x32xf32, #tpu.memory_space<vmem>>, %arg26: memref<2x16xf32, #tpu.memory_space<vmem>>, %arg27: memref<32x32xf32, #tpu.memory_space<vmem>>, %arg28: memref<32x4xf32, #tpu.memory_space<vmem>>, %arg29: memref<1x4xf32, #tpu.memory_space<vmem>>, %arg30: memref<32x64xf32, #tpu.memory_space<vmem>>, %arg31: memref<32x64xf32, #tpu.memory_space<vmem>>, %arg32: memref<1x64xf32, #tpu.memory_space<vmem>>, %arg33: memref<64x4xf32, #tpu.memory_space<vmem>>, %arg34: memref<1x4xf32, #tpu.memory_space<vmem>>, %arg35: memref<2x12xf32, #tpu.memory_space<vmem>>, %arg36: memref<4x8x8xf32, #tpu.memory_space<vmem>>) attributes {dimension_semantics = [], scalar_prefetch = 0 : i64, scratch_operands = 0 : i64, tpu.core_type = #tpu.core_type<tc>} {
    %c0 = arith.constant 0 : index
    %c0_0 = arith.constant 0 : index
    %0 = vector.load %arg0[%c0, %c0_0] : memref<2x16xf32, #tpu.memory_space<vmem>>, vector<2x16xf32>
    %c0_1 = arith.constant 0 : index
    %c0_2 = arith.constant 0 : index
    %1 = vector.load %arg1[%c0_1, %c0_2] : memref<16x512xf32, #tpu.memory_space<vmem>>, vector<16x512xf32>
    %cst = arith.constant dense<0.000000e+00> : vector<2x512xf32>
    %2 = tpu.matmul %0, %1, %cst {dimension_numbers = #tpu.dot_dimension_numbers<[1], [0], [0], [1], [0, 0, 1, 1], [], []>} : vector<2x16xf32>, vector<16x512xf32>, vector<2x512xf32> -> vector<2x512xf32>
    %c0_3 = arith.constant 0 : index
    %c0_4 = arith.constant 0 : index
    %3 = vector.load %arg2[%c0_3, %c0_4] : memref<1x512xf32, #tpu.memory_space<vmem>>, vector<1x512xf32>
    %4 = vector.broadcast %3 : vector<1x512xf32> to vector<2x512xf32>
    %5 = arith.addf %2, %4 : vector<2x512xf32>
    %cst_5 = arith.constant 0.000000e+00 : f32
    %6 = vector.broadcast %cst_5 : f32 to vector<2x512xf32>
    %7 = arith.maximumf %5, %6 : vector<2x512xf32>
    %c0_6 = arith.constant 0 : index
    %c0_7 = arith.constant 0 : index
    %8 = vector.load %arg3[%c0_6, %c0_7] : memref<512x32xf32, #tpu.memory_space<vmem>>, vector<512x32xf32>
    %cst_8 = arith.constant dense<0.000000e+00> : vector<2x32xf32>
    %9 = tpu.matmul %7, %8, %cst_8 {dimension_numbers = #tpu.dot_dimension_numbers<[1], [0], [0], [1], [0, 0, 1, 1], [], []>} : vector<2x512xf32>, vector<512x32xf32>, vector<2x32xf32> -> vector<2x32xf32>
    %c0_9 = arith.constant 0 : index
    %c0_10 = arith.constant 0 : index
    %10 = vector.load %arg4[%c0_9, %c0_10] : memref<32x32xf32, #tpu.memory_space<vmem>>, vector<32x32xf32>
    %cst_11 = arith.constant dense<0.000000e+00> : vector<2x32xf32>
    %11 = tpu.matmul %9, %10, %cst_11 {dimension_numbers = #tpu.dot_dimension_numbers<[1], [0], [0], [1], [0, 0, 1, 1], [], []>} : vector<2x32xf32>, vector<32x32xf32>, vector<2x32xf32> -> vector<2x32xf32>
    %c0_12 = arith.constant 0 : index
    %c0_13 = arith.constant 0 : index
    %12 = vector.load %arg5[%c0_12, %c0_13] : memref<1x32xf32, #tpu.memory_space<vmem>>, vector<1x32xf32>
    %13 = vector.broadcast %12 : vector<1x32xf32> to vector<2x32xf32>
    %14 = arith.addf %11, %13 : vector<2x32xf32>
    %15 = arith.negf %14 : vector<2x32xf32>
    %16 = math.exp %15 : vector<2x32xf32>
    %cst_14 = arith.constant 1.000000e+00 : f32
    %17 = vector.broadcast %cst_14 : f32 to vector<2x32xf32>
    %18 = arith.addf %17, %16 : vector<2x32xf32>
    %19 = arith.divf %17, %18 : vector<2x32xf32>
    %20 = arith.mulf %9, %19 : vector<2x32xf32>
    %c0_15 = arith.constant 0 : index
    %c0_16 = arith.constant 0 : index
    %21 = vector.load %arg6[%c0_15, %c0_16] : memref<32x4xf32, #tpu.memory_space<vmem>>, vector<32x4xf32>
    %cst_17 = arith.constant dense<0.000000e+00> : vector<2x4xf32>
    %22 = tpu.matmul %20, %21, %cst_17 {dimension_numbers = #tpu.dot_dimension_numbers<[1], [0], [0], [1], [0, 0, 1, 1], [], []>} : vector<2x32xf32>, vector<32x4xf32>, vector<2x4xf32> -> vector<2x4xf32>
    %c0_18 = arith.constant 0 : index
    %c0_19 = arith.constant 0 : index
    %23 = vector.load %arg7[%c0_18, %c0_19] : memref<1x4xf32, #tpu.memory_space<vmem>>, vector<1x4xf32>
    %24 = vector.broadcast %23 : vector<1x4xf32> to vector<2x4xf32>
    %25 = arith.addf %22, %24 : vector<2x4xf32>
    %c0_20 = arith.constant 0 : index
    %c0_21 = arith.constant 0 : index
    %26 = vector.load %arg8[%c0_20, %c0_21] : memref<8x192xf32, #tpu.memory_space<vmem>>, vector<8x192xf32>
    %c0_22 = arith.constant 0 : index
    %c0_23 = arith.constant 0 : index
    %27 = vector.load %arg9[%c0_22, %c0_23] : memref<192x32xf32, #tpu.memory_space<vmem>>, vector<192x32xf32>
    %cst_24 = arith.constant dense<0.000000e+00> : vector<8x32xf32>
    %28 = tpu.matmul %26, %27, %cst_24 {dimension_numbers = #tpu.dot_dimension_numbers<[1], [0], [0], [1], [0, 0, 1, 1], [], []>} : vector<8x192xf32>, vector<192x32xf32>, vector<8x32xf32> -> vector<8x32xf32>
    %c0_25 = arith.constant 0 : index
    %c0_26 = arith.constant 0 : index
    %29 = vector.load %arg11[%c0_25, %c0_26] : memref<8x32xf32, #tpu.memory_space<vmem>>, vector<8x32xf32>
    %30 = tpu.concatenate %29, %29 in 0 : vector<8x32xf32>, vector<8x32xf32> -> vector<16x32xf32>
    %c0_27 = arith.constant 0 : index
    %c0_28 = arith.constant 0 : index
    %31 = vector.load %arg10[%c0_27, %c0_28] : memref<16x8xf32, #tpu.memory_space<vmem>>, vector<16x8xf32>
    %cst_29 = arith.constant dense<0.000000e+00> : vector<16x32xf32>
    %32 = tpu.matmul %31, %28, %cst_29 {dimension_numbers = #tpu.dot_dimension_numbers<[1], [0], [0], [1], [0, 0, 1, 1], [], []>} : vector<16x8xf32>, vector<8x32xf32>, vector<16x32xf32> -> vector<16x32xf32>
    %33 = arith.addf %32, %30 : vector<16x32xf32>
    %c0_30 = arith.constant 0 : index
    %c0_31 = arith.constant 0 : index
    %34 = vector.load %arg12[%c0_30, %c0_31] : memref<1x32xf32, #tpu.memory_space<vmem>>, vector<1x32xf32>
    %c0_32 = arith.constant 0 : index
    %c0_33 = arith.constant 0 : index
    %35 = vector.load %arg13[%c0_32, %c0_33] : memref<1x32xf32, #tpu.memory_space<vmem>>, vector<1x32xf32>
    %cst_34 = arith.constant dense<0.000000e+00> : vector<16xf32>
    %36 = vector.multi_reduction <add>, %33, %cst_34 [1] : vector<16x32xf32> to vector<16xf32>
    %37 = vector.shape_cast %36 : vector<16xf32> to vector<16x1xf32>
    %cst_35 = arith.constant 3.200000e+01 : f32
    %38 = vector.broadcast %cst_35 : f32 to vector<16x1xf32>
    %39 = arith.divf %37, %38 : vector<16x1xf32>
    %40 = vector.broadcast %39 : vector<16x1xf32> to vector<16x32xf32>
    %41 = arith.subf %33, %40 : vector<16x32xf32>
    %42 = vector.broadcast %39 : vector<16x1xf32> to vector<16x32xf32>
    %43 = arith.subf %33, %42 : vector<16x32xf32>
    %44 = arith.mulf %41, %43 : vector<16x32xf32>
    %cst_36 = arith.constant dense<0.000000e+00> : vector<16xf32>
    %45 = vector.multi_reduction <add>, %44, %cst_36 [1] : vector<16x32xf32> to vector<16xf32>
    %46 = vector.shape_cast %45 : vector<16xf32> to vector<16x1xf32>
    %cst_37 = arith.constant 3.200000e+01 : f32
    %47 = vector.broadcast %cst_37 : f32 to vector<16x1xf32>
    %48 = arith.divf %46, %47 : vector<16x1xf32>
    %49 = vector.broadcast %39 : vector<16x1xf32> to vector<16x32xf32>
    %50 = arith.subf %33, %49 : vector<16x32xf32>
    %cst_38 = arith.constant 9.99999974E-6 : f32
    %51 = vector.broadcast %cst_38 : f32 to vector<16x1xf32>
    %52 = arith.addf %48, %51 : vector<16x1xf32>
    %53 = math.rsqrt %52 : vector<16x1xf32>
    %54 = vector.broadcast %53 : vector<16x1xf32> to vector<16x32xf32>
    %55 = arith.mulf %50, %54 : vector<16x32xf32>
    %56 = vector.broadcast %34 : vector<1x32xf32> to vector<16x32xf32>
    %57 = arith.mulf %55, %56 : vector<16x32xf32>
    %58 = vector.broadcast %35 : vector<1x32xf32> to vector<16x32xf32>
    %59 = arith.addf %57, %58 : vector<16x32xf32>
    %c0_39 = arith.constant 0 : index
    %c0_40 = arith.constant 0 : index
    %60 = vector.load %arg14[%c0_39, %c0_40] : memref<32x96xf32, #tpu.memory_space<vmem>>, vector<32x96xf32>
    %cst_41 = arith.constant dense<0.000000e+00> : vector<16x96xf32>
    %61 = tpu.matmul %59, %60, %cst_41 {dimension_numbers = #tpu.dot_dimension_numbers<[1], [0], [0], [1], [0, 0, 1, 1], [], []>} : vector<16x32xf32>, vector<32x96xf32>, vector<16x96xf32> -> vector<16x96xf32>
    %c0_42 = arith.constant 0 : index
    %c0_43 = arith.constant 0 : index
    %62 = vector.load %arg15[%c0_42, %c0_43] : memref<1x96xf32, #tpu.memory_space<vmem>>, vector<1x96xf32>
    %63 = vector.broadcast %62 : vector<1x96xf32> to vector<16x96xf32>
    %64 = arith.addf %61, %63 : vector<16x96xf32>
    %65 = vector.extract_strided_slice %64 {offsets = [0, 0], sizes = [16, 32], strides = [1, 1]} : vector<16x96xf32> to vector<16x32xf32>
    %66 = vector.extract_strided_slice %64 {offsets = [0, 32], sizes = [16, 32], strides = [1, 1]} : vector<16x96xf32> to vector<16x32xf32>
    %67 = vector.extract_strided_slice %64 {offsets = [0, 64], sizes = [16, 32], strides = [1, 1]} : vector<16x96xf32> to vector<16x32xf32>
    %68 = vector.extract_strided_slice %65 {offsets = [0, 0], sizes = [16, 16], strides = [1, 1]} : vector<16x32xf32> to vector<16x16xf32>
    %69 = vector.extract_strided_slice %65 {offsets = [0, 16], sizes = [16, 16], strides = [1, 1]} : vector<16x32xf32> to vector<16x16xf32>
    %70 = tpu.concatenate %68, %69 in 0 : vector<16x16xf32>, vector<16x16xf32> -> vector<32x16xf32>
    %71 = vector.extract_strided_slice %66 {offsets = [0, 0], sizes = [16, 16], strides = [1, 1]} : vector<16x32xf32> to vector<16x16xf32>
    %72 = vector.extract_strided_slice %66 {offsets = [0, 16], sizes = [16, 16], strides = [1, 1]} : vector<16x32xf32> to vector<16x16xf32>
    %73 = tpu.concatenate %71, %72 in 0 : vector<16x16xf32>, vector<16x16xf32> -> vector<32x16xf32>
    %74 = vector.extract_strided_slice %67 {offsets = [0, 0], sizes = [16, 16], strides = [1, 1]} : vector<16x32xf32> to vector<16x16xf32>
    %75 = vector.extract_strided_slice %67 {offsets = [0, 16], sizes = [16, 16], strides = [1, 1]} : vector<16x32xf32> to vector<16x16xf32>
    %76 = tpu.concatenate %74, %75 in 0 : vector<16x16xf32>, vector<16x16xf32> -> vector<32x16xf32>
    %77 = tpu.transpose %73, [1, 0] : vector<32x16xf32> -> vector<16x32xf32>
    %cst_44 = arith.constant dense<0.000000e+00> : vector<32x32xf32>
    %78 = tpu.matmul %70, %77, %cst_44 {dimension_numbers = #tpu.dot_dimension_numbers<[1], [0], [0], [1], [0, 0, 1, 1], [], []>} : vector<32x16xf32>, vector<16x32xf32>, vector<32x32xf32> -> vector<32x32xf32>
    %c0_45 = arith.constant 0 : index
    %c0_46 = arith.constant 0 : index
    %79 = vector.load %arg27[%c0_45, %c0_46] : memref<32x32xf32, #tpu.memory_space<vmem>>, vector<32x32xf32>
    %80 = arith.addf %78, %79 : vector<32x32xf32>
    %cst_47 = arith.constant dense<0xFF800000> : vector<32xf32>
    %81 = vector.multi_reduction <maximumf>, %80, %cst_47 [1] : vector<32x32xf32> to vector<32xf32>
    %82 = vector.shape_cast %81 : vector<32xf32> to vector<32x1xf32>
    %83 = vector.broadcast %82 : vector<32x1xf32> to vector<32x32xf32>
    %84 = arith.subf %80, %83 : vector<32x32xf32>
    %85 = math.exp %84 : vector<32x32xf32>
    %cst_48 = arith.constant dense<0.000000e+00> : vector<32xf32>
    %86 = vector.multi_reduction <add>, %85, %cst_48 [1] : vector<32x32xf32> to vector<32xf32>
    %87 = vector.shape_cast %86 : vector<32xf32> to vector<32x1xf32>
    %88 = tpu.reciprocal %87 {approx = true} : vector<32x1xf32> -> vector<32x1xf32>
    %89 = vector.broadcast %88 : vector<32x1xf32> to vector<32x32xf32>
    %90 = arith.mulf %85, %89 : vector<32x32xf32>
    %cst_49 = arith.constant dense<0.000000e+00> : vector<32x16xf32>
    %91 = tpu.matmul %90, %76, %cst_49 {dimension_numbers = #tpu.dot_dimension_numbers<[1], [0], [0], [1], [0, 0, 1, 1], [], []>} : vector<32x32xf32>, vector<32x16xf32>, vector<32x16xf32> -> vector<32x16xf32>
    %92 = vector.extract_strided_slice %91 {offsets = [0, 0], sizes = [16, 16], strides = [1, 1]} : vector<32x16xf32> to vector<16x16xf32>
    %93 = vector.extract_strided_slice %91 {offsets = [16, 0], sizes = [16, 16], strides = [1, 1]} : vector<32x16xf32> to vector<16x16xf32>
    %94 = tpu.concatenate %92, %93 in 1 : vector<16x16xf32>, vector<16x16xf32> -> vector<16x32xf32>
    %c0_50 = arith.constant 0 : index
    %c0_51 = arith.constant 0 : index
    %95 = vector.load %arg16[%c0_50, %c0_51] : memref<32x32xf32, #tpu.memory_space<vmem>>, vector<32x32xf32>
    %cst_52 = arith.constant dense<0.000000e+00> : vector<16x32xf32>
    %96 = tpu.matmul %94, %95, %cst_52 {dimension_numbers = #tpu.dot_dimension_numbers<[1], [0], [0], [1], [0, 0, 1, 1], [], []>} : vector<16x32xf32>, vector<32x32xf32>, vector<16x32xf32> -> vector<16x32xf32>
    %c0_53 = arith.constant 0 : index
    %c0_54 = arith.constant 0 : index
    %97 = vector.load %arg17[%c0_53, %c0_54] : memref<1x32xf32, #tpu.memory_space<vmem>>, vector<1x32xf32>
    %98 = vector.broadcast %97 : vector<1x32xf32> to vector<16x32xf32>
    %99 = arith.addf %96, %98 : vector<16x32xf32>
    %100 = arith.addf %33, %99 : vector<16x32xf32>
    %c0_55 = arith.constant 0 : index
    %c0_56 = arith.constant 0 : index
    %101 = vector.load %arg18[%c0_55, %c0_56] : memref<1x32xf32, #tpu.memory_space<vmem>>, vector<1x32xf32>
    %c0_57 = arith.constant 0 : index
    %c0_58 = arith.constant 0 : index
    %102 = vector.load %arg19[%c0_57, %c0_58] : memref<1x32xf32, #tpu.memory_space<vmem>>, vector<1x32xf32>
    %cst_59 = arith.constant dense<0.000000e+00> : vector<16xf32>
    %103 = vector.multi_reduction <add>, %100, %cst_59 [1] : vector<16x32xf32> to vector<16xf32>
    %104 = vector.shape_cast %103 : vector<16xf32> to vector<16x1xf32>
    %cst_60 = arith.constant 3.200000e+01 : f32
    %105 = vector.broadcast %cst_60 : f32 to vector<16x1xf32>
    %106 = arith.divf %104, %105 : vector<16x1xf32>
    %107 = vector.broadcast %106 : vector<16x1xf32> to vector<16x32xf32>
    %108 = arith.subf %100, %107 : vector<16x32xf32>
    %109 = vector.broadcast %106 : vector<16x1xf32> to vector<16x32xf32>
    %110 = arith.subf %100, %109 : vector<16x32xf32>
    %111 = arith.mulf %108, %110 : vector<16x32xf32>
    %cst_61 = arith.constant dense<0.000000e+00> : vector<16xf32>
    %112 = vector.multi_reduction <add>, %111, %cst_61 [1] : vector<16x32xf32> to vector<16xf32>
    %113 = vector.shape_cast %112 : vector<16xf32> to vector<16x1xf32>
    %cst_62 = arith.constant 3.200000e+01 : f32
    %114 = vector.broadcast %cst_62 : f32 to vector<16x1xf32>
    %115 = arith.divf %113, %114 : vector<16x1xf32>
    %116 = vector.broadcast %106 : vector<16x1xf32> to vector<16x32xf32>
    %117 = arith.subf %100, %116 : vector<16x32xf32>
    %cst_63 = arith.constant 9.99999974E-6 : f32
    %118 = vector.broadcast %cst_63 : f32 to vector<16x1xf32>
    %119 = arith.addf %115, %118 : vector<16x1xf32>
    %120 = math.rsqrt %119 : vector<16x1xf32>
    %121 = vector.broadcast %120 : vector<16x1xf32> to vector<16x32xf32>
    %122 = arith.mulf %117, %121 : vector<16x32xf32>
    %123 = vector.broadcast %101 : vector<1x32xf32> to vector<16x32xf32>
    %124 = arith.mulf %122, %123 : vector<16x32xf32>
    %125 = vector.broadcast %102 : vector<1x32xf32> to vector<16x32xf32>
    %126 = arith.addf %124, %125 : vector<16x32xf32>
    %c0_64 = arith.constant 0 : index
    %c0_65 = arith.constant 0 : index
    %127 = vector.load %arg20[%c0_64, %c0_65] : memref<32x64xf32, #tpu.memory_space<vmem>>, vector<32x64xf32>
    %cst_66 = arith.constant dense<0.000000e+00> : vector<16x64xf32>
    %128 = tpu.matmul %126, %127, %cst_66 {dimension_numbers = #tpu.dot_dimension_numbers<[1], [0], [0], [1], [0, 0, 1, 1], [], []>} : vector<16x32xf32>, vector<32x64xf32>, vector<16x64xf32> -> vector<16x64xf32>
    %c0_67 = arith.constant 0 : index
    %c0_68 = arith.constant 0 : index
    %129 = vector.load %arg21[%c0_67, %c0_68] : memref<1x64xf32, #tpu.memory_space<vmem>>, vector<1x64xf32>
    %130 = vector.broadcast %129 : vector<1x64xf32> to vector<16x64xf32>
    %131 = arith.addf %128, %130 : vector<16x64xf32>
    %cst_69 = arith.constant 0.000000e+00 : f32
    %132 = vector.broadcast %cst_69 : f32 to vector<16x64xf32>
    %133 = arith.maximumf %131, %132 : vector<16x64xf32>
    %c0_70 = arith.constant 0 : index
    %c0_71 = arith.constant 0 : index
    %134 = vector.load %arg22[%c0_70, %c0_71] : memref<64x32xf32, #tpu.memory_space<vmem>>, vector<64x32xf32>
    %cst_72 = arith.constant dense<0.000000e+00> : vector<16x32xf32>
    %135 = tpu.matmul %133, %134, %cst_72 {dimension_numbers = #tpu.dot_dimension_numbers<[1], [0], [0], [1], [0, 0, 1, 1], [], []>} : vector<16x64xf32>, vector<64x32xf32>, vector<16x32xf32> -> vector<16x32xf32>
    %c0_73 = arith.constant 0 : index
    %c0_74 = arith.constant 0 : index
    %136 = vector.load %arg23[%c0_73, %c0_74] : memref<1x32xf32, #tpu.memory_space<vmem>>, vector<1x32xf32>
    %137 = vector.broadcast %136 : vector<1x32xf32> to vector<16x32xf32>
    %138 = arith.addf %135, %137 : vector<16x32xf32>
    %139 = arith.addf %100, %138 : vector<16x32xf32>
    %c0_75 = arith.constant 0 : index
    %c0_76 = arith.constant 0 : index
    %140 = vector.load %arg24[%c0_75, %c0_76] : memref<1x32xf32, #tpu.memory_space<vmem>>, vector<1x32xf32>
    %c0_77 = arith.constant 0 : index
    %c0_78 = arith.constant 0 : index
    %141 = vector.load %arg25[%c0_77, %c0_78] : memref<1x32xf32, #tpu.memory_space<vmem>>, vector<1x32xf32>
    %cst_79 = arith.constant dense<0.000000e+00> : vector<16xf32>
    %142 = vector.multi_reduction <add>, %139, %cst_79 [1] : vector<16x32xf32> to vector<16xf32>
    %143 = vector.shape_cast %142 : vector<16xf32> to vector<16x1xf32>
    %cst_80 = arith.constant 3.200000e+01 : f32
    %144 = vector.broadcast %cst_80 : f32 to vector<16x1xf32>
    %145 = arith.divf %143, %144 : vector<16x1xf32>
    %146 = vector.broadcast %145 : vector<16x1xf32> to vector<16x32xf32>
    %147 = arith.subf %139, %146 : vector<16x32xf32>
    %148 = vector.broadcast %145 : vector<16x1xf32> to vector<16x32xf32>
    %149 = arith.subf %139, %148 : vector<16x32xf32>
    %150 = arith.mulf %147, %149 : vector<16x32xf32>
    %cst_81 = arith.constant dense<0.000000e+00> : vector<16xf32>
    %151 = vector.multi_reduction <add>, %150, %cst_81 [1] : vector<16x32xf32> to vector<16xf32>
    %152 = vector.shape_cast %151 : vector<16xf32> to vector<16x1xf32>
    %cst_82 = arith.constant 3.200000e+01 : f32
    %153 = vector.broadcast %cst_82 : f32 to vector<16x1xf32>
    %154 = arith.divf %152, %153 : vector<16x1xf32>
    %155 = vector.broadcast %145 : vector<16x1xf32> to vector<16x32xf32>
    %156 = arith.subf %139, %155 : vector<16x32xf32>
    %cst_83 = arith.constant 9.99999974E-6 : f32
    %157 = vector.broadcast %cst_83 : f32 to vector<16x1xf32>
    %158 = arith.addf %154, %157 : vector<16x1xf32>
    %159 = math.rsqrt %158 : vector<16x1xf32>
    %160 = vector.broadcast %159 : vector<16x1xf32> to vector<16x32xf32>
    %161 = arith.mulf %156, %160 : vector<16x32xf32>
    %162 = vector.broadcast %140 : vector<1x32xf32> to vector<16x32xf32>
    %163 = arith.mulf %161, %162 : vector<16x32xf32>
    %164 = vector.broadcast %141 : vector<1x32xf32> to vector<16x32xf32>
    %165 = arith.addf %163, %164 : vector<16x32xf32>
    %c0_84 = arith.constant 0 : index
    %c0_85 = arith.constant 0 : index
    %166 = vector.load %arg26[%c0_84, %c0_85] : memref<2x16xf32, #tpu.memory_space<vmem>>, vector<2x16xf32>
    %cst_86 = arith.constant dense<0.000000e+00> : vector<2x32xf32>
    %167 = tpu.matmul %166, %165, %cst_86 {dimension_numbers = #tpu.dot_dimension_numbers<[1], [0], [0], [1], [0, 0, 1, 1], [], []>} : vector<2x16xf32>, vector<16x32xf32>, vector<2x32xf32> -> vector<2x32xf32>
    %c0_87 = arith.constant 0 : index
    %c0_88 = arith.constant 0 : index
    %168 = vector.load %arg28[%c0_87, %c0_88] : memref<32x4xf32, #tpu.memory_space<vmem>>, vector<32x4xf32>
    %cst_89 = arith.constant dense<0.000000e+00> : vector<2x4xf32>
    %169 = tpu.matmul %167, %168, %cst_89 {dimension_numbers = #tpu.dot_dimension_numbers<[1], [0], [0], [1], [0, 0, 1, 1], [], []>} : vector<2x32xf32>, vector<32x4xf32>, vector<2x4xf32> -> vector<2x4xf32>
    %c0_90 = arith.constant 0 : index
    %c0_91 = arith.constant 0 : index
    %170 = vector.load %arg29[%c0_90, %c0_91] : memref<1x4xf32, #tpu.memory_space<vmem>>, vector<1x4xf32>
    %171 = vector.broadcast %170 : vector<1x4xf32> to vector<2x4xf32>
    %172 = arith.addf %169, %171 : vector<2x4xf32>
    %173 = vector.extract_strided_slice %90 {offsets = [0, 0], sizes = [8, 8], strides = [1, 1]} : vector<32x32xf32> to vector<8x8xf32>
    %c0_92 = arith.constant 0 : index
    %c0_93 = arith.constant 0 : index
    %c0_94 = arith.constant 0 : index
    %174 = vector.load %arg36[%c0_92, %c0_93, %c0_94] : memref<4x8x8xf32, #tpu.memory_space<vmem>>, vector<1x8x8xf32>
    %175 = vector.shape_cast %174 : vector<1x8x8xf32> to vector<8x8xf32>
    %176 = vector.shape_cast %173 : vector<8x8xf32> to vector<1x8x8xf32>
    tpu.vector_store %arg36[%c0_92, %c0_93, %c0_94], %176 {strides = array<i32>} : memref<4x8x8xf32, #tpu.memory_space<vmem>>, vector<1x8x8xf32>,
    %177 = vector.extract_strided_slice %90 {offsets = [16, 16], sizes = [8, 8], strides = [1, 1]} : vector<32x32xf32> to vector<8x8xf32>
    %c1 = arith.constant 1 : index
    %c0_95 = arith.constant 0 : index
    %c0_96 = arith.constant 0 : index
    %178 = vector.load %arg36[%c1, %c0_95, %c0_96] : memref<4x8x8xf32, #tpu.memory_space<vmem>>, vector<1x8x8xf32>
    %179 = vector.shape_cast %178 : vector<1x8x8xf32> to vector<8x8xf32>
    %180 = vector.shape_cast %177 : vector<8x8xf32> to vector<1x8x8xf32>
    tpu.vector_store %arg36[%c1, %c0_95, %c0_96], %180 {strides = array<i32>} : memref<4x8x8xf32, #tpu.memory_space<vmem>>, vector<1x8x8xf32>,
    %181 = vector.extract_strided_slice %90 {offsets = [8, 8], sizes = [8, 8], strides = [1, 1]} : vector<32x32xf32> to vector<8x8xf32>
    %c2 = arith.constant 2 : index
    %c0_97 = arith.constant 0 : index
    %c0_98 = arith.constant 0 : index
    %182 = vector.load %arg36[%c2, %c0_97, %c0_98] : memref<4x8x8xf32, #tpu.memory_space<vmem>>, vector<1x8x8xf32>
    %183 = vector.shape_cast %182 : vector<1x8x8xf32> to vector<8x8xf32>
    %184 = vector.shape_cast %181 : vector<8x8xf32> to vector<1x8x8xf32>
    tpu.vector_store %arg36[%c2, %c0_97, %c0_98], %184 {strides = array<i32>} : memref<4x8x8xf32, #tpu.memory_space<vmem>>, vector<1x8x8xf32>,
    %185 = vector.extract_strided_slice %90 {offsets = [24, 24], sizes = [8, 8], strides = [1, 1]} : vector<32x32xf32> to vector<8x8xf32>
    %c3 = arith.constant 3 : index
    %c0_99 = arith.constant 0 : index
    %c0_100 = arith.constant 0 : index
    %186 = vector.load %arg36[%c3, %c0_99, %c0_100] : memref<4x8x8xf32, #tpu.memory_space<vmem>>, vector<1x8x8xf32>
    %187 = vector.shape_cast %186 : vector<1x8x8xf32> to vector<8x8xf32>
    %188 = vector.shape_cast %185 : vector<8x8xf32> to vector<1x8x8xf32>
    tpu.vector_store %arg36[%c3, %c0_99, %c0_100], %188 {strides = array<i32>} : memref<4x8x8xf32, #tpu.memory_space<vmem>>, vector<1x8x8xf32>,
    %c0_101 = arith.constant 0 : index
    %c0_102 = arith.constant 0 : index
    %189 = vector.load %arg30[%c0_101, %c0_102] : memref<32x64xf32, #tpu.memory_space<vmem>>, vector<32x64xf32>
    %cst_103 = arith.constant dense<0.000000e+00> : vector<2x64xf32>
    %190 = tpu.matmul %20, %189, %cst_103 {dimension_numbers = #tpu.dot_dimension_numbers<[1], [0], [0], [1], [0, 0, 1, 1], [], []>} : vector<2x32xf32>, vector<32x64xf32>, vector<2x64xf32> -> vector<2x64xf32>
    %c0_104 = arith.constant 0 : index
    %c0_105 = arith.constant 0 : index
    %191 = vector.load %arg31[%c0_104, %c0_105] : memref<32x64xf32, #tpu.memory_space<vmem>>, vector<32x64xf32>
    %cst_106 = arith.constant dense<0.000000e+00> : vector<2x64xf32>
    %192 = tpu.matmul %167, %191, %cst_106 {dimension_numbers = #tpu.dot_dimension_numbers<[1], [0], [0], [1], [0, 0, 1, 1], [], []>} : vector<2x32xf32>, vector<32x64xf32>, vector<2x64xf32> -> vector<2x64xf32>
    %193 = arith.addf %190, %192 : vector<2x64xf32>
    %c0_107 = arith.constant 0 : index
    %c0_108 = arith.constant 0 : index
    %194 = vector.load %arg32[%c0_107, %c0_108] : memref<1x64xf32, #tpu.memory_space<vmem>>, vector<1x64xf32>
    %195 = vector.broadcast %194 : vector<1x64xf32> to vector<2x64xf32>
    %196 = arith.addf %193, %195 : vector<2x64xf32>
    %cst_109 = arith.constant 0.000000e+00 : f32
    %197 = vector.broadcast %cst_109 : f32 to vector<2x64xf32>
    %198 = arith.maximumf %196, %197 : vector<2x64xf32>
    %c0_110 = arith.constant 0 : index
    %c0_111 = arith.constant 0 : index
    %199 = vector.load %arg33[%c0_110, %c0_111] : memref<64x4xf32, #tpu.memory_space<vmem>>, vector<64x4xf32>
    %cst_112 = arith.constant dense<0.000000e+00> : vector<2x4xf32>
    %200 = tpu.matmul %198, %199, %cst_112 {dimension_numbers = #tpu.dot_dimension_numbers<[1], [0], [0], [1], [0, 0, 1, 1], [], []>} : vector<2x64xf32>, vector<64x4xf32>, vector<2x4xf32> -> vector<2x4xf32>
    %c0_113 = arith.constant 0 : index
    %c0_114 = arith.constant 0 : index
    %201 = vector.load %arg34[%c0_113, %c0_114] : memref<1x4xf32, #tpu.memory_space<vmem>>, vector<1x4xf32>
    %202 = vector.broadcast %201 : vector<1x4xf32> to vector<2x4xf32>
    %203 = arith.addf %200, %202 : vector<2x4xf32>
    %204 = tpu.concatenate %203, %172, %25 in 1 : vector<2x4xf32>, vector<2x4xf32>, vector<2x4xf32> -> vector<2x12xf32>
    %c0_115 = arith.constant 0 : index
    %c0_116 = arith.constant 0 : index
    %205 = vector.load %arg35[%c0_115, %c0_116] : memref<2x12xf32, #tpu.memory_space<vmem>>, vector<2x12xf32>
    tpu.vector_store %arg35[%c0_115, %c0_116], %204 {strides = array<i32>} : memref<2x12xf32, #tpu.memory_space<vmem>>, vector<2x12xf32>,
    return
  }
}

</mosaic_0001>

<bundles_post_ra>
// kernel: mmdf_forward.1
= control target key start
LH: loop header
LB: loop body
LE: loop exit
PB: predicated region body
PF: predicated region fallthrough
CT: control target
= control target key end

     0   :  { %s1449_s3 = smov 1   ;;  %s1450_s10 = smov 3   ;;  %vm168_vm0 = vcmask 130048   ;;  %vm509_vm1 = vcmask 523264   ;;  %vm408_vm2 = vcmask 261120   ;;  %vm556_vm3 = vcmask 64512   ;;  %s1881_s0 = inlined_call_operand.smem [shape: u32[37], index: -1, kind: input, shape index: {}] }
   0x1   :  { %s1270_s6 = sld [smem:[%s1881_s0 + %s1449_s3]]   ;;  %s1451_s14 = smov 9  }
   0x2   :  { %s1_s9 = sld [smem:[%s1881_s0]]   ;;  %s1452_s18 = smov 2  }
   0x3   :  { %s1505_s13 = sld [smem:[%s1881_s0 + %s1450_s10]]   ;;  %s1453_s22 = smov 8  }
   0x4   :  { %s1556_s17 = sld [smem:[%s1881_s0 + %s1451_s14]]   ;;  %s1454_s26 = smov 5  }
   0x5   :  { %s1271_s21 = sld [smem:[%s1881_s0 + %s1452_s18]]   ;;  %s1455_s30 = smov 4  }
   0x6   :  { %s1277_s25 = sld [smem:[%s1881_s0 + %s1453_s22]]   ;;  %s1456_s4 = smov 10  }
   0x7   :  { %v156_v0 = vld [vmem:[%s1270_s6 + $0x30] sm:$0xff]  ;;  %v157_v1 = vld [vmem:[%s1270_s6 + $0x38] sm:$0xff]  ;;  %v154_v5 = vld [vmem:[%s1270_s6 + $0x20] sm:$0xff]  ;;  %s1615_s29 = sld [smem:[%s1881_s0 + %s1454_s26]]   ;;  %s1457_s8 = smov 6  }
   0x8   :  { %v152_v2 = vld [vmem:[%s1270_s6 + $0x10] sm:$0xff]  ;;  %226 = vmatpush.msra.mxu2 %v156_v0  ;;  %246 = vmatpush.msra.mxu3 %v157_v1  ;;  %v153_v3 = vld [vmem:[%s1270_s6 + $0x18] sm:$0xff]  ;;  %v149_v4 = vld [vmem:[%s1_s9] sm:$0x3]  ;;  %s1273_s3 = sld [smem:[%s1881_s0 + %s1455_s30]]   ;;  %s1458_s12 = smov 11  }
   0x9   :  { %186 = vmatpush.msra.mxu0 %v154_v5  ;;  %v155_v6 = vld [vmem:[%s1270_s6 + $0x28] sm:$0xff]  ;;  %v150_v7 = vld [vmem:[%s1270_s6] sm:$0xff]  ;;  %v303_v8 = vld [vmem:[%s1505_s13 + $0x178] sm:$0xff]  ;;  %s1279_s7 = sld [smem:[%s1881_s0 + %s1456_s4]]   ;;  %s1459_s16 = smov 7  }
   0xa   :  { %227 = vmatpush.msra.mxu2 %v152_v2  ;;  %247 = vmatpush.msra.mxu3 %v153_v3  ;;  %v151_v9 = vld [vmem:[%s1270_s6 + $0x8] sm:$0xff]  ;;  %v302_v10 = vld [vmem:[%s1505_s13 + $0x170] sm:$0xff]  ;;  %v319_v11 = vld [vmem:[%s1505_s13 + $0x1f8] sm:$0xff]  ;;  %s1275_s11 = sld [smem:[%s1881_s0 + %s1457_s8]]   ;;  %s1460_s20 = smov 12  }
   0xb   :  { %1308 = vmatmul.msk.f32.vlgmr.msra.gmra.mxu2 %vm168_vm0, %v149_v4  ;;  %1309 = vmatmul.msk.f32.vlgmr.msra.gmra.mxu3 %vm168_vm0, %v149_v4  ;;  %v318_v12 = vld [vmem:[%s1505_s13 + $0x1f0] sm:$0xff]  ;;  %v301_v13 = vld [vmem:[%s1505_s13 + $0x168] sm:$0xff]  ;;  %v300_v15 = vld [vmem:[%s1505_s13 + $0x160] sm:$0xff]  ;;  %s1280_s15 = sld [smem:[%s1881_s0 + %s1458_s12]]   ;;  %s1464_s4 = smov 14  }
   0xc   :  { %206 = vmatpush.msra.mxu1 %v155_v6  ;;  %187 = vmatpush.msra.mxu0 %v150_v7  ;;  %v317_v14 = vld [vmem:[%s1505_s13 + $0x1e8] sm:$0xff]  ;;  %v271_v16 = vld [vmem:[%s1505_s13 + $0x78] sm:$0xff]  ;;  %v316_v17 = vld [vmem:[%s1505_s13 + $0x1e0] sm:$0xff]  ;;  %s1641_s19 = sld [smem:[%s1881_s0 + %s1459_s16]]   ;;  %s1465_s8 = smov 112  }
   0xd   :  { %1306 = vmatmul.msk.f32.vlgmr.msra.gmra.mxu0 %vm168_vm0, %v149_v4  ;;  %360 = vmatpush.msrb.mxu2 %v303_v8  ;;  %v287_v18 = vld [vmem:[%s1505_s13 + $0xf8] sm:$0xff]  ;;  %v270_v20 = vld [vmem:[%s1505_s13 + $0x70] sm:$0xff]  ;;  %v269_v23 = vld [vmem:[%s1505_s13 + $0x68] sm:$0xff]  ;;  %s1652_s24 = sld [smem:[%s1881_s0 + %s1460_s20]]   ;;  %s1466_s9 = smov 96  }
   0xe   :  { %207 = vmatpush.msra.mxu1 %v151_v9  ;;  %380 = vmatpush.msrb.mxu3 %v319_v11  ;;  %v299_v19 = vld [vmem:[%s1505_s13 + $0x158] sm:$0xff]  ;;  %v286_v21 = vld [vmem:[%s1505_s13 + $0xf0] sm:$0xff]  ;;  %v285_v24 = vld [vmem:[%s1505_s13 + $0xe8] sm:$0xff]  ;;  %s1467_s10 = smov 27   ;;  %s1468_s14 = smov 64  }
   0xf   :  { %1307 = vmatmul.msk.f32.vlgmr.msra.gmra.mxu1 %vm168_vm0, %v149_v4  ;;  %361 = vmatpush.msrb.mxu2 %v302_v10  ;;  %v315_v22 = vld [vmem:[%s1505_s13 + $0x1d8] sm:$0xff]  ;;  %v298_v25 = vld [vmem:[%s1505_s13 + $0x150] sm:$0xff]  ;;  %v268_v26 = vld [vmem:[%s1505_s13 + $0x60] sm:$0xff]  ;;  %s1470_s20 = smov 16   ;;  %s1476_s16 = smov 22  }
  0x10   :  { %381 = vmatpush.msrb.mxu3 %v318_v12  ;;  %320 = vmatpush.msrb.mxu0 %v271_v16  ;;  %v314_v27 = vld [vmem:[%s1505_s13 + $0x1d0] sm:$0xff]  ;;  %v284_v28 = vld [vmem:[%s1505_s13 + $0xe0] sm:$0xff]  ;;  %v297_v29 = vld [vmem:[%s1505_s13 + $0x148] sm:$0xff]  ;;  %s1477_s23 = smov 23   ;;  %s1478_s27 = smov 30  }
  0x11   :  { %362 = vmatpush.msrb.mxu2 %v301_v13  ;;  %340 = vmatpush.msrb.mxu1 %v287_v18  ;;  %v267_v30 = vld [vmem:[%s1505_s13 + $0x58] sm:$0xff]  ;;  %v313_v31 = vld [vmem:[%s1505_s13 + $0x1c8] sm:$0xff]  ;;  %v296_v33 = vld [vmem:[%s1505_s13 + $0x140] sm:$0xff]  ;;  %s1292_s26 = sld [smem:[%s1881_s0 + %s1477_s23]]   ;;  %s1479_s2 = smov 24  }
  0x12   :  { %382 = vmatpush.msrb.mxu3 %v317_v14  ;;  %321 = vmatpush.msrb.mxu0 %v270_v20  ;;  %v283_v32 = vld [vmem:[%s1505_s13 + $0xd8] sm:$0xff]  ;;  %v266_v34 = vld [vmem:[%s1505_s13 + $0x50] sm:$0xff]  ;;  %v312_v35 = vld [vmem:[%s1505_s13 + $0x1c0] sm:$0xff]  ;;  %s1299_s1 = sld [smem:[%s1881_s0 + %s1478_s27]]   ;;  %s1480_s6 = smov 25  }
  0x13   :  { %363 = vmatpush.msrb.mxu2 %v300_v15  ;;  %341 = vmatpush.msrb.mxu1 %v286_v21  ;;  %v282_v36 = vld [vmem:[%s1505_s13 + $0xd0] sm:$0xff]  ;;  %v295_v37 = vld [vmem:[%s1505_s13 + $0x138] sm:$0xff]  ;;  %v265_v38 = vld [vmem:[%s1505_s13 + $0x48] sm:$0xff]  ;;  %s1818_s5 = sld [smem:[%s1881_s0 + %s1479_s2]]  }
  0x14   :  { %383 = vmatpush.msrb.mxu3 %v316_v17  ;;  %322 = vmatpush.msrb.mxu0 %v269_v23  ;;  %v311_v39 = vld [vmem:[%s1505_s13 + $0x1b8] sm:$0xff]  ;;  %v281_v40 = vld [vmem:[%s1505_s13 + $0xc8] sm:$0xff]  ;;  %v294_v41 = vld [vmem:[%s1505_s13 + $0x130] sm:$0xff] }
  0x15   :  { %364 = vmatpush.msrb.mxu2 %v299_v19  ;;  %342 = vmatpush.msrb.mxu1 %v285_v24  ;;  %v264_v42 = vld [vmem:[%s1505_s13 + $0x40] sm:$0xff]  ;;  %v310_v43 = vld [vmem:[%s1505_s13 + $0x1b0] sm:$0xff]  ;;  %v293_v45 = vld [vmem:[%s1505_s13 + $0x128] sm:$0xff] }
  0x16   :  { %384 = vmatpush.msrb.mxu3 %v315_v22  ;;  %323 = vmatpush.msrb.mxu0 %v268_v26  ;;  %v280_v44 = vld [vmem:[%s1505_s13 + $0xc0] sm:$0xff]  ;;  %v263_v46 = vld [vmem:[%s1505_s13 + $0x38] sm:$0xff]  ;;  %v309_v47 = vld [vmem:[%s1505_s13 + $0x1a8] sm:$0xff] }
  0x17   :  { %365 = vmatpush.msrb.mxu2 %v298_v25  ;;  %343 = vmatpush.msrb.mxu1 %v284_v28  ;;  %v279_v48 = vld [vmem:[%s1505_s13 + $0xb8] sm:$0xff]  ;;  %v292_v49 = vld [vmem:[%s1505_s13 + $0x120] sm:$0xff]  ;;  %v262_v50 = vld [vmem:[%s1505_s13 + $0x30] sm:$0xff] }
  0x18   :  { %385 = vmatpush.msrb.mxu3 %v314_v27  ;;  %324 = vmatpush.msrb.mxu0 %v267_v30  ;;  %v308_v51 = vld [vmem:[%s1505_s13 + $0x1a0] sm:$0xff]  ;;  %v278_v52 = vld [vmem:[%s1505_s13 + $0xb0] sm:$0xff]  ;;  %v291_v53 = vld [vmem:[%s1505_s13 + $0x118] sm:$0xff] }
  0x19   :  { %366 = vmatpush.msrb.mxu2 %v297_v29  ;;  %344 = vmatpush.msrb.mxu1 %v283_v32  ;;  %v261_v54 = vld [vmem:[%s1505_s13 + $0x28] sm:$0xff]  ;;  %v307_v55 = vld [vmem:[%s1505_s13 + $0x198] sm:$0xff]  ;;  %v290_v57 = vld [vmem:[%s1505_s13 + $0x110] sm:$0xff] }
  0x1a   :  { %386 = vmatpush.msrb.mxu3 %v313_v31  ;;  %325 = vmatpush.msrb.mxu0 %v266_v34  ;;  %v277_v56 = vld [vmem:[%s1505_s13 + $0xa8] sm:$0xff]  ;;  %v306_v58 = vld [vmem:[%s1505_s13 + $0x190] sm:$0xff]  ;;  %v288_v61 = vld [vmem:[%s1505_s13 + $0x100] sm:$0xff] }
  0x1b   :  { %367 = vmatpush.msrb.mxu2 %v296_v33  ;;  %345 = vmatpush.msrb.mxu1 %v282_v36  ;;  %v289_v59 = vld [vmem:[%s1505_s13 + $0x108] sm:$0xff]  ;;  %v500_v62 = vld [vmem:[%s1556_s17 + $0x78] sm:$0xff]  ;;  %v304_v63 = vld [vmem:[%s1505_s13 + $0x180] sm:$0xff] }
  0x1c   :  { %387 = vmatpush.msrb.mxu3 %v312_v35  ;;  %326 = vmatpush.msrb.mxu0 %v265_v38  ;;  %v305_v60 = vld [vmem:[%s1505_s13 + $0x188] sm:$0xff]  ;;  %v508_v0 = vld [vmem:[%s1556_s17 + $0xb8] sm:$0xff]  ;;  %v499_v1 = vld [vmem:[%s1556_s17 + $0x70] sm:$0xff] }
  0x1d   :  { %368 = vmatpush.msrb.mxu2 %v295_v37  ;;  %346 = vmatpush.msrb.mxu1 %v281_v40  ;;  %v498_v2 = vld [vmem:[%s1556_s17 + $0x68] sm:$0xff]  ;;  %v497_v3 = vld [vmem:[%s1556_s17 + $0x60] sm:$0xff]  ;;  %v496_v4 = vld [vmem:[%s1556_s17 + $0x58] sm:$0xff] }
  0x1e   :  { %388 = vmatpush.msrb.mxu3 %v311_v39  ;;  %327 = vmatpush.msrb.mxu0 %v264_v42  ;;  %v495_v5 = vld [vmem:[%s1556_s17 + $0x50] sm:$0xff]  ;;  %v494_v6 = vld [vmem:[%s1556_s17 + $0x48] sm:$0xff]  ;;  %v493_v7 = vld [vmem:[%s1556_s17 + $0x40] sm:$0xff] }
  0x1f   :  { %369 = vmatpush.msrb.mxu2 %v294_v41  ;;  %347 = vmatpush.msrb.mxu1 %v280_v44  ;;  %v492_v8 = vld [vmem:[%s1556_s17 + $0x38] sm:$0xff]  ;;  %v260_v9 = vld [vmem:[%s1505_s13 + $0x20] sm:$0xff]  ;;  %v491_v11 = vld [vmem:[%s1556_s17 + $0x30] sm:$0xff] }
  0x20   :  { %389 = vmatpush.msrb.mxu3 %v310_v43  ;;  %328 = vmatpush.msrb.mxu0 %v263_v46  ;;  %v276_v10 = vld [vmem:[%s1505_s13 + $0xa0] sm:$0xff]  ;;  %v507_v12 = vld [vmem:[%s1556_s17 + $0xb0] sm:$0xff]  ;;  %v259_v13 = vld [vmem:[%s1505_s13 + $0x18] sm:$0xff] }
  0x21   :  { %370 = vmatpush.msrb.mxu2 %v293_v45  ;;  %348 = vmatpush.msrb.mxu1 %v279_v48  ;;  %v275_v14 = vld [vmem:[%s1505_s13 + $0x98] sm:$0xff]  ;;  %v490_v15 = vld [vmem:[%s1556_s17 + $0x28] sm:$0xff]  ;;  %v258_v17 = vld [vmem:[%s1505_s13 + $0x10] sm:$0xff] }
  0x22   :  { %390 = vmatpush.msrb.mxu3 %v309_v47  ;;  %329 = vmatpush.msrb.mxu0 %v262_v50  ;;  %v506_v16 = vld [vmem:[%s1556_s17 + $0xa8] sm:$0xff]  ;;  %v274_v18 = vld [vmem:[%s1505_s13 + $0x90] sm:$0xff]  ;;  %v489_v19 = vld [vmem:[%s1556_s17 + $0x20] sm:$0xff] }
  0x23   :  { %371 = vmatpush.msrb.mxu2 %v292_v49  ;;  %349 = vmatpush.msrb.mxu1 %v278_v52  ;;  %v505_v20 = vld [vmem:[%s1556_s17 + $0xa0] sm:$0xff]  ;;  %v257_v21 = vld [vmem:[%s1505_s13 + $0x8] sm:$0xff]  ;;  %v488_v23 = vld [vmem:[%s1556_s17 + $0x18] sm:$0xff] }
  0x24   :  { %391 = vmatpush.msrb.mxu3 %v308_v51  ;;  %330 = vmatpush.msrb.mxu0 %v261_v54  ;;  %v273_v22 = vld [vmem:[%s1505_s13 + $0x88] sm:$0xff]  ;;  %v504_v24 = vld [vmem:[%s1556_s17 + $0x98] sm:$0xff]  ;;  %v256_v25 = vld [vmem:[%s1505_s13] sm:$0xff] }
  0x25   :  { %372 = vmatpush.msrb.mxu2 %v291_v53  ;;  %350 = vmatpush.msrb.mxu1 %v277_v56  ;;  %v272_v26 = vld [vmem:[%s1505_s13 + $0x80] sm:$0xff]  ;;  %v487_v27 = vld [vmem:[%s1556_s17 + $0x10] sm:$0xff]  ;;  %v486_v29 = vld [vmem:[%s1556_s17 + $0x8] sm:$0xff]  ;;  %s1296_s13 = sld [smem:[%s1881_s0 + %s1467_s10]]  }
  0x26   :  { %392 = vmatpush.msrb.mxu3 %v307_v55  ;;  %331 = vmatpush.msrb.mxu0 %v260_v9  ;;  %v503_v28 = vld [vmem:[%s1556_s17 + $0x90] sm:$0xff]  ;;  %v502_v30 = vld [vmem:[%s1556_s17 + $0x88] sm:$0xff]  ;;  %v485_v31 = vld [vmem:[%s1556_s17] sm:$0xff]  ;;  %s1825_s10 = sld [smem:[%s1881_s0 + %s1480_s6]]  }
  0x27   :  { %373 = vmatpush.msrb.mxu2 %v290_v57  ;;  %351 = vmatpush.msrb.mxu1 %v276_v10  ;;  %v501_v32 = vld [vmem:[%s1556_s17 + $0x80] sm:$0xff]  ;;  %v484_v51 = vld [vmem:[%s1277_s25 + $0x8] sm:$0xff]  ;;  %v403_v52 = vld [vmem:[%s1273_s3 + $0x18] sm:$0xff] }
  0x28   :  { %393 = vmatpush.msrb.mxu3 %v306_v58  ;;  %332 = vmatpush.msrb.mxu0 %v259_v13  ;;  %v158_v33 = vld [vmem:[%s1271_s21] sm:$0xf]  ;;  %v402_v53 = vld [vmem:[%s1273_s3 + $0x10] sm:$0xff]  ;;  %v401_v54 = vld [vmem:[%s1273_s3 + $0x8] sm:$0xff]  ;;  %s1778_s21 = sld [smem:[%s1881_s0 + %s1476_s16]]  }
  0x29   :  { %374 = vmatpush.msrb.mxu2 %v289_v59  ;;  %352 = vmatpush.msrb.mxu1 %v275_v14  ;;  %v160_v34 = vperm.slane %v158_v33, 0  ;;  %v161_v35 = vperm.slane %v158_v33, 1  ;;  %v162_v37 = vperm.slane %v158_v33, 2  ;;  %v163_v38 = vperm.slane %v158_v33, 3  ;;  %v483_v50 = vld [vmem:[%s1277_s25] sm:$0xff]  ;;  %s1462_s25 = smov 13  }
  0x2a   :  { %394 = vmatpush.msrb.mxu3 %v305_v60  ;;  %333 = vmatpush.msrb.mxu0 %v258_v17  ;;  %v400_v55 = vld [vmem:[%s1273_s3] sm:$0xff]  ;;  %s1666_s28 = sld [smem:[%s1881_s0 + %s1462_s25]]   ;;  %s1471_s25 = smov 17  }
  0x2b   :  { %375 = vmatpush.msrb.mxu2 %v288_v61  ;;  %353 = vmatpush.msrb.mxu1 %v274_v18 }
  0x2c   :  { %395 = vmatpush.msrb.mxu3 %v304_v63  ;;  %334 = vmatpush.msrb.mxu0 %v257_v21 }
  0x2d   :  { %513 = vmatpush.msra.mxu2 %v500_v62  ;;  %354 = vmatpush.msrb.mxu1 %v273_v22 }
  0x2e   :  { %541 = vmatpush.msra.mxu3 %v508_v0  ;;  %335 = vmatpush.msrb.mxu0 %v256_v25 }
  0x2f   :  { %514 = vmatpush.msra.mxu2 %v499_v1  ;;  %355 = vmatpush.msrb.mxu1 %v272_v26 }
  0x30   :  { %542 = vmatpush.msra.mxu3 %v507_v12  ;;  %424 = vmatpush.msra.mxu0 %v403_v52  ;;  %v553_v12 = vld [vmem:[%s1280_s15] sm:$0xff]  ;;  %s1469_s15 = smov 36  }
  0x31   :  { %515 = vmatpush.msra.mxu2 %v498_v2  ;;  %v554_v2 = vld [vmem:[%s1279_s7] sm:$0xff]  ;;  %s1710_s18 = sld [smem:[%s1881_s0 + %s1469_s15]]  }
  0x32   :  { %543 = vmatpush.msra.mxu3 %v506_v16  ;;  %425 = vmatpush.msra.mxu0 %v402_v53 }
  0x33   :  { %516 = vmatpush.msra.mxu2 %v497_v3  ;;  %v555_v3 = vld [vmem:[%s1279_s7 + $0x8] sm:$0xff]  ;;  %s1283_s7 = sld [smem:[%s1881_s0 + %s1464_s4]]   ;;  %s1473_s4 = smov 19  }
  0x34   :  { %544 = vmatpush.msra.mxu3 %v505_v20  ;;  %426 = vmatpush.msra.mxu0 %v401_v54 }
  0x35   :  { %517 = vmatpush.msra.mxu2 %v496_v4  ;;  %v455_v4 = vld [vmem:[%s1275_s11 + $0x18] sm:$0xff] }
  0x36   :  { %545 = vmatpush.msra.mxu3 %v504_v24  ;;  %427 = vmatpush.msra.mxu0 %v400_v55 }
  0x37   :  { %518 = vmatpush.msra.mxu2 %v495_v5  ;;  %v454_v5 = vld [vmem:[%s1275_s11 + $0x10] sm:$0xff]  ;;  %475 = vmatpush.msra.mxu1 %v455_v4 }
  0x38   :  { %546 = vmatpush.msra.mxu3 %v503_v28 }
  0x39   :  { %519 = vmatpush.msra.mxu2 %v494_v6  ;;  %v453_v6 = vld [vmem:[%s1275_s11 + $0x8] sm:$0xff]  ;;  %476 = vmatpush.msra.mxu1 %v454_v5  ;;  %v649_v52 = vld [vmem:[%s1283_s7] sm:$0xff] }
  0x3a   :  { %547 = vmatpush.msra.mxu3 %v502_v30 }
  0x3b   :  { %520 = vmatpush.msra.mxu2 %v493_v7  ;;  %v1400_v7 = vld [vmem:[%s1615_s29] ss:$0 sm:$0xff]  ;;  %477 = vmatpush.msra.mxu1 %v453_v6  ;;  %s1463_s29 = smov 15  }
  0x3c   :  { %548 = vmatpush.msra.mxu3 %v501_v32  ;;  %v1461_v32 = vmov 32.0   ;;  %s1672_s3 = sld [smem:[%s1881_s0 + %s1463_s29]]   ;;  %s1472_s29 = smov 18  }
  0x3d   :  { %521 = vmatpush.msra.mxu2 %v492_v8  ;;  %v452_v8 = vld [vmem:[%s1275_s11] sm:$0xff]  ;;  %s1481_s11 = smov 120  }
  0x3e   :  { %478 = vmatpush.msra.mxu1 %v452_v8 }
  0x3f   :  { %522 = vmatpush.msra.mxu2 %v491_v11 }
  0x41   :  { %523 = vmatpush.msra.mxu2 %v490_v15 }
  0x43   :  { %524 = vmatpush.msra.mxu2 %v489_v19 }
  0x45   :  { %525 = vmatpush.msra.mxu2 %v488_v23 }
  0x47   :  { %526 = vmatpush.msra.mxu2 %v487_v27 }
  0x49   :  { %527 = vmatpush.msra.mxu2 %v486_v29 }
  0x4b   :  { %528 = vmatpush.msra.mxu2 %v485_v31 }
  0x8a   :  { %v189_v36 = vpop.f32.mrf.mxu0 }
  0x8b   :  { %v190_v39 = vadd.f32 %v189_v36, %v160_v34 }
  0x8c   :  { %v209_v40 = vpop.f32.mrf.mxu1 }
  0x8d   :  { %v252_v41 = vmax.f32 %v190_v39, 0.0  ;;  %v210_v42 = vadd.f32 %v209_v40, %v161_v35 }
  0x8e   :  { %v229_v43 = vpop.f32.mrf.mxu2  ;;  %v249_v44 = vpop.f32.mrf.mxu3 }
  0x8f   :  { %v230_v45 = vadd.f32 %v229_v43, %v162_v37  ;;  %v250_v46 = vadd.f32 %v249_v44, %v163_v38  ;;  %v253_v47 = vmax.f32 %v210_v42, 0.0  ;;  %336 = vmatmul.f32.vlgmr.msrb.gmra.mxu0 %v252_v41 }
  0x91   :  { %v254_v48 = vmax.f32 %v230_v45, 0.0  ;;  %v255_v49 = vmax.f32 %v250_v46, 0.0  ;;  %356 = vmatmul.f32.vlgmr.msrb.gmra.mxu1 %v253_v47 }
  0x93   :  { %376 = vmatmul.f32.vlgmr.msrb.gmra.mxu2 %v254_v48  ;;  %396 = vmatmul.f32.vlgmr.msrb.gmra.mxu3 %v255_v49  ;;  %v652_v49 = vld [vmem:[%s1283_s7 + $0x18] sm:$0xff] }
  0x94   :  { %675 = vmatpush.msrb.mxu1 %v652_v49 }
  0x9b   :  { %529 = vmatmul.f32.vlgmr.msra.gmra.mxu2 %v483_v50  ;;  %1313 = vmatmul.msk.f32.vlgmr.msra.gmra.mxu3 %vm509_vm1, %v484_v51  ;;  %v651_v50 = vld [vmem:[%s1283_s7 + $0x10] sm:$0xff]  ;;  %v650_v51 = vld [vmem:[%s1283_s7 + $0x8] sm:$0xff]  ;;  %s1755_s7 = sld [smem:[%s1881_s0 + %s1473_s4]]  }
  0x9c   :  { %676 = vmatpush.msrb.mxu1 %v651_v50 }
  0x9e   :  { %677 = vmatpush.msrb.mxu1 %v650_v51 }
  0xa0   :  { %678 = vmatpush.msrb.mxu1 %v649_v52 }
 0x10c   :  { %v337_v56 = vpop.f32.mrf.mxu0 }
 0x10e   :  { %v357_v57 = vpop.f32.mrf.mxu1 }
 0x10f   :  { %v358_v58 = vadd.f32 %v357_v57, %v337_v56 }
 0x116   :  { %v377_v59 = vpop.f32.mrf.mxu2  ;;  %v397_v60 = vpop.f32.mrf.mxu3 }
 0x117   :  { %v378_v61 = vadd.f32 %v377_v59, %v358_v58 }
 0x119   :  { %v398_v62 = vadd.f32 %v397_v60, %v378_v61 }
 0x11b   :  { %1310 = vmatmul.msk.f32.vlgmr.msra.gmra.mxu0 %vm408_vm2, %v398_v62 }
 0x11e   :  { %v530_v63 = vpop.f32.mrf.mxu2  ;;  %v550_v0 = vpop.f32.mrf.mxu3 }
 0x11f   :  { %v551_v1 = vadd.f32 %v550_v0, %v530_v63 }
 0x121   :  { %578 = vmatpush.msrb.mxu0 %v551_v1 }
 0x123   :  { %1314 = vmatmul.msk.f32.vlgmr.msrb.gmra.mxu0 %vm556_vm3, %v554_v2 }
 0x12b   :  { %1315 = vmatmul.msk.f32.gmra.mxu0 %vm556_vm3, %v555_v3  ;;  %v1402_v3 = vld [vmem:[%s1652_s24] ss:$0 sm:$0xff]  ;;  %s1285_s24 = sld [smem:[%s1881_s0 + %s1470_s20]]  }
 0x198   :  { %v429_v9 = vpop.f32.mrf.mxu0 }
 0x199   :  { %v430_v10 = vadd.f32 %v1400_v7, %v429_v9  ;;  %v1403_v7 = vld [vmem:[%s1666_s28] ss:$0 sm:$0xff]  ;;  %s1286_s28 = sld [smem:[%s1881_s0 + %s1471_s25]]  }
 0x19b   :  { %v1311_v11 = vmul.f32 -1.442695, %v430_v10 }
 0x19d   :  { %1415 = vpow2.f32 %v1311_v11 }
 0x1a0   :  { %v580_v13 = vpop.f32.mrf.mxu0 }
 0x1a1   :  { %v1634_v14 = vadd.f32 %v580_v13, %v553_v12 }
 0x1a3   :  { %v1416_v15 = vpop.eup %1415  ;;  %v588_v16 = vsel %vm408_vm2, %v1634_v14, 0.0 }
 0x1a4   :  { %v435_v17 = vadd.f32 1.0, %v1416_v15  ;;  %589 = vadd.xlane.f32.xlu0 %v588_v16 }
 0x1a6   :  { %1417 = vrcp.f32 %v435_v17  ;;  %v447_v24 = vand.u32 2147483648, %v435_v17  ;;  %v445_v26 = vand.u32 2147483647, %v435_v17  ;;  %vm441_vm5 = vweird.f32 %v435_v17 }
 0x1a7   :  { %1419 = vrcp.f32 %v1461_v32  ;;  %v692_v32 = vld [vmem:[%s1296_s13] sm:$0xff] }
 0x1a8   :  { %v583_v18 = vpop.f32.mrf.mxu0  ;;  %v448_v28 = vor.u32 1.1754944e-38, %v447_v24  ;;  %vm446_vm7 = vcmp.eq.f32.partialorder %v445_v26, 8.507059e+37 }
 0x1a9   :  { %v1643_v19 = vadd.f32 %v583_v18, %v553_v12 }
 0x1ab   :  { %v591_v20 = vsel %vm408_vm2, %v1643_v19, 0.0 }
 0x1ac   :  { %v1418_v21 = vpop.eup %1417  ;;  %592 = vadd.xlane.f32.xlu0 %v591_v20 }
 0x1ad   :  { %v437_v22 = vmul.f32 %v1418_v21, %v435_v17  ;;  %vm442_vm4 = vweird.f32 %v1418_v21  ;;  %v1420_v33 = vpop.eup %1419 }
 0x1ae   :  { %vm443_vm6 = vmor %vm441_vm5, %vm442_vm4  ;;  %v595_v34 = vmul.f32 32.0, %v1420_v33  ;;  %vm599_vm8 = vweird.f32 %v1420_v33 }
 0x1af   :  { %v438_v23 = vsub.f32 1.0, %v437_v22 }
 0x1b0   :  { %v596_v35 = vsub.f32 1.0, %v595_v34 }
 0x1b1   :  { %v439_v25 = vmul.f32 %v1418_v21, %v438_v23 }
 0x1b2   :  { %v597_v36 = vmul.f32 %v1420_v33, %v596_v35 }
 0x1b3   :  { %v440_v27 = vadd.f32 %v1418_v21, %v439_v25 }
 0x1b4   :  { %v598_v37 = vadd.f32 %v1420_v33, %v597_v36  ;;  %v693_v36 = vld [vmem:[%s1296_s13 + $0x8] sm:$0xff] }
 0x1b5   :  { %v444_v29 = vsel %vm443_vm6, %v1418_v21, %v440_v27  ;;  %v1404_v21 = vld [vmem:[%s1672_s3] ss:$0 sm:$0xff]  ;;  %s1742_s3 = sld [smem:[%s1881_s0 + %s1472_s29]]  }
 0x1b6   :  { %v449_v30 = vsel %vm446_vm7, %v448_v28, %v444_v29  ;;  %v1656_v38 = vsel %vm599_vm8, %v1420_v33, %v598_v37 }
 0x1b7   :  { %v1647_v31 = vmul.f32 %v449_v30, %v398_v62 }
 0x1b9   :  { %1312 = vmatmul.msk.f32.vlgmr.msra.gmra.mxu1 %vm408_vm2, %v1647_v31 }
 0x217   :  { %v590_v39 = vpop.xlane.xlu0 %589 }
 0x218   :  { %v601_v40 = vmul.f32 %v1656_v38, %v590_v39 }
 0x21a   :  { %v603_v41 = vsub.f32 %v1634_v14, %v601_v40 }
 0x21c   :  { %v605_v42 = vmul.f32 %v603_v41, %v603_v41 }
 0x21e   :  { %v607_v43 = vsel %vm408_vm2, %v605_v42, 0.0 }
 0x21f   :  { %608 = vadd.xlane.f32.xlu1 %v607_v43  ;;  %v593_v44 = vpop.xlane.xlu0 %592 }
 0x220   :  { %v602_v45 = vmul.f32 %v1656_v38, %v593_v44 }
 0x222   :  { %v604_v46 = vsub.f32 %v1643_v19, %v602_v45  ;;  %v695_v45 = vld [vmem:[%s1296_s13 + $0x18] sm:$0xff] }
 0x224   :  { %v606_v47 = vmul.f32 %v604_v46, %v604_v46 }
 0x226   :  { %v610_v48 = vsel %vm408_vm2, %v606_v47, 0.0 }
 0x227   :  { %611 = vadd.xlane.f32.xlu1 %v610_v48 }
 0x236   :  { %v1683_v18 = vpop.f32.mrf.mxu1 }
 0x292   :  { %v609_v53 = vpop.xlane.xlu1 %608 }
 0x293   :  { %v613_v54 = vmul.f32 %v609_v53, %v1656_v38 }
 0x295   :  { %v615_v55 = vadd.f32 1e-05, %v613_v54 }
 0x297   :  { %1421 = vrsqrt.f32 %v615_v55  ;;  %vm623_vm10 = vweird.f32 %v615_v55 }
 0x29a   :  { %v612_v56 = vpop.xlane.xlu1 %611 }
 0x29b   :  { %v614_v57 = vmul.f32 %v612_v56, %v1656_v38 }
 0x29d   :  { %v1422_v58 = vpop.eup %1421  ;;  %v616_v59 = vadd.f32 1e-05, %v614_v57 }
 0x29e   :  { %v618_v60 = vmul.f32 %v1422_v58, %v615_v55  ;;  %vm624_vm9 = vweird.f32 %v1422_v58 }
 0x29f   :  { %1423 = vrsqrt.f32 %v616_v59  ;;  %vm625_vm11 = vmor %vm623_vm10, %vm624_vm9  ;;  %vm633_vm13 = vweird.f32 %v616_v59 }
 0x2a0   :  { %v619_v61 = vmul.f32 %v1422_v58, %v618_v60 }
 0x2a2   :  { %v620_v62 = vmul.f32 0.5, %v619_v61 }
 0x2a4   :  { %v621_v63 = vsub.f32 1.5, %v620_v62 }
 0x2a5   :  { %v1424_v0 = vpop.eup %1423 }
 0x2a6   :  { %v622_v1 = vmul.f32 %v1422_v58, %v621_v63  ;;  %v628_v2 = vmul.f32 %v1424_v0, %v616_v59  ;;  %vm634_vm12 = vweird.f32 %v1424_v0 }
 0x2a7   :  { %vm635_vm14 = vmor %vm633_vm13, %vm634_vm12 }
 0x2a8   :  { %v626_v4 = vsel %vm625_vm11, %v1422_v58, %v622_v1  ;;  %v629_v5 = vmul.f32 %v1424_v0, %v628_v2 }
 0x2a9   :  { %v637_v6 = vmul.f32 %v626_v4, %v603_v41  ;;  %v694_v41 = vld [vmem:[%s1296_s13 + $0x10] sm:$0xff]  ;;  %s1475_s13 = smov 20  }
 0x2aa   :  { %v630_v8 = vmul.f32 0.5, %v629_v5 }
 0x2ab   :  { %v642_v9 = vmul.f32 %v1402_v3, %v637_v6 }
 0x2ac   :  { %v631_v10 = vsub.f32 1.5, %v630_v8 }
 0x2ad   :  { %v647_v11 = vadd.f32 %v1403_v7, %v642_v9 }
 0x2ae   :  { %v632_v12 = vmul.f32 %v1424_v0, %v631_v10 }
 0x2af   :  { %1316 = vmatmul.msk.f32.vlgmr.msrb.gmra.mxu1 %vm408_vm2, %v647_v11 }
 0x2b0   :  { %v636_v13 = vsel %vm635_vm14, %v1424_v0, %v632_v12 }
 0x2b1   :  { %v638_v15 = vmul.f32 %v636_v13, %v604_v46 }
 0x2b3   :  { %v643_v16 = vmul.f32 %v1402_v3, %v638_v15 }
 0x2b5   :  { %v648_v17 = vadd.f32 %v1403_v7, %v643_v16 }
 0x2b7   :  { %1317 = vmatmul.msk.f32.gmra.mxu1 %vm408_vm2, %v648_v17 }
 0x32c   :  { %v680_v20 = vpop.f32.mrf.mxu1 }
 0x32d   :  { %v681_v24 = vadd.f32 %v1404_v21, %v680_v20 }
 0x334   :  { %v683_v22 = vpop.f32.mrf.mxu1 }
 0x335   :  { %v684_v23 = vadd.f32 %v1404_v21, %v683_v22 }
 0x337   :  { %690 = vrot.lane.b32.xlu2 %v684_v23, %s1465_s8  ;;  %v1395_v49 = vpack.i.bf16 %v681_v24, %v684_v23 }
 0x33f   :  { %688 = vrot.lane.b32.xlu2 %v681_v24, %s1465_s8 }
 0x347   :  { %698 = vrot.lane.b32.xlu2 %v684_v23, %s1466_s9 }
 0x34f   :  { %696 = vrot.lane.b32.xlu2 %v681_v24, %s1466_s9 }
 0x391   :  { %v691_v25 = vpop.permute.xlu2 %690 }
 0x392   :  { %702 = vrot.lane.b32.xlu0 %v691_v25, %s1466_s9 }
 0x399   :  { %v689_v26 = vpop.permute.xlu2 %688 }
 0x39a   :  { %700 = vrot.lane.b32.xlu1 %v689_v26, %s1466_s9  ;;  %v1390_v50 = vpack.i.bf16 %v689_v26, %v691_v25  ;;  %s1474_s9 = smov 21  }
 0x39b   :  { %s1768_s12 = sld [smem:[%s1881_s0 + %s1474_s9]]  }
 0x3a1   :  { %v699_v28 = vpop.permute.xlu2 %698 }
 0x3a9   :  { %v697_v30 = vpop.permute.xlu2 %696 }
 0x404   :  { %v703_v27 = vpop.permute.xlu0 %702 }
 0x405   :  { %1318 = vmatpush.xpose.msk.msra.mxu0 %vm168_vm0, %v703_v27 }
 0x40c   :  { %v701_v29 = vpop.permute.xlu1 %700 }
 0x40d   :  { %1319 = vmatpush.xpose.msk.msra.mxu0 %vm168_vm0, %v701_v29  ;;  %v858_v29 = vld [vmem:[%s1285_s24 + $0x10] sm:$0xff] }
 0x411   :  { %1320 = vmatpush.xpose.msk.msra.mxu0 %vm168_vm0, %v699_v28  ;;  %v859_v28 = vld [vmem:[%s1285_s24 + $0x18] sm:$0xff] }
 0x412   :  { %882 = vmatpush.msra.mxu1 %v859_v28 }
 0x414   :  { %883 = vmatpush.msra.mxu1 %v858_v29 }
 0x415   :  { %1321 = vmatpush.xpose.msk.msra.mxu0 %vm168_vm0, %v697_v30  ;;  %v857_v30 = vld [vmem:[%s1285_s24 + $0x8] sm:$0xff] }
 0x416   :  { %884 = vmatpush.msra.mxu1 %v857_v30 }
 0x418   :  { %1322 = vmatmul.msk.f32.vlgmr.msra.gmra.mxu0 %vm168_vm0, %v681_v24 }
 0x420   :  { %1323 = vmatmul.msk.f32.gmra.mxu0 %vm168_vm0, %v684_v23 }
 0x428   :  { %1324 = vmatmul.msk.f32.gmra.mxu0 %vm168_vm0, %v689_v26 }
 0x430   :  { %1325 = vmatmul.msk.f32.gmra.mxu0 %vm168_vm0, %v691_v25 }
 0x495   :  { %v737_v33 = vpop.f32.mrf.mxu0 }
 0x496   :  { %v738_v34 = vadd.f32 %v737_v33, %v692_v32 }
 0x498   :  { %v749_v35 = vsel %vm408_vm2, %v738_v34, -inf }
 0x499   :  { %750 = vmax.xlane.f32.xlu2 %v749_v35 }
 0x49d   :  { %v740_v37 = vpop.f32.mrf.mxu0 }
 0x49e   :  { %v741_v39 = vadd.f32 %v740_v37, %v693_v36  ;;  %v856_v36 = vld [vmem:[%s1285_s24] sm:$0xff]  ;;  %s1485_s24 = smov 32  }
 0x49f   :  { %885 = vmatpush.msra.mxu1 %v856_v36  ;;  %s1301_s27 = sld [smem:[%s1881_s0 + %s1485_s24]]  }
 0x4a0   :  { %v752_v40 = vsel %vm408_vm2, %v741_v39, -inf }
 0x4a1   :  { %753 = vmax.xlane.f32.xlu0 %v752_v40 }
 0x4a5   :  { %v743_v42 = vpop.f32.mrf.mxu0 }
 0x4a6   :  { %v744_v43 = vadd.f32 %v743_v42, %v694_v41  ;;  %v1405_v42 = vld [vmem:[%s1286_s28] ss:$0 sm:$0xff]  ;;  %s1486_s28 = smov 33  }
 0x4a7   :  { %s1302_s2 = sld [smem:[%s1881_s0 + %s1486_s28]]  }
 0x4a8   :  { %v755_v44 = vsel %vm408_vm2, %v744_v43, -inf }
 0x4a9   :  { %756 = vmax.xlane.f32.xlu1 %v755_v44 }
 0x4ad   :  { %v746_v46 = vpop.f32.mrf.mxu0 }
 0x4ae   :  { %v747_v47 = vadd.f32 %v746_v46, %v695_v45 }
 0x4b0   :  { %v758_v48 = vsel %vm408_vm2, %v747_v47, -inf }
 0x4b1   :  { %759 = vmax.xlane.f32.xlu2 %v758_v48 }
 0x4c2   :  { %1396 = vrot.lane.b32.xlu1 %v1395_v49, %s1468_s14 }
 0x4c9   :  { %1391 = vrot.lane.b32.xlu2 %v1390_v50, %s1468_s14 }
 0x50c   :  { %v751_v51 = vpop.xlane.xlu2 %750 }
 0x50d   :  { %v761_v52 = vsub.f32 %v738_v34, %v751_v51 }
 0x50f   :  { %v765_v53 = vmul.f32 1.442695, %v761_v52 }
 0x511   :  { %1425 = vpow2.f32 %v765_v53 }
 0x514   :  { %v754_v54 = vpop.xlane.xlu0 %753 }
 0x515   :  { %v762_v55 = vsub.f32 %v741_v39, %v754_v54 }
 0x517   :  { %v1426_v56 = vpop.eup %1425  ;;  %v767_v57 = vmul.f32 1.442695, %v762_v55 }
 0x518   :  { %v773_v58 = vsel %vm408_vm2, %v1426_v56, 0.0 }
 0x519   :  { %1427 = vpow2.f32 %v767_v57  ;;  %774 = vadd.xlane.f32.xlu0 %v773_v58 }
 0x51c   :  { %v757_v59 = vpop.xlane.xlu1 %756 }
 0x51d   :  { %v763_v60 = vsub.f32 %v744_v43, %v757_v59 }
 0x51f   :  { %v1428_v61 = vpop.eup %1427  ;;  %v769_v62 = vmul.f32 1.442695, %v763_v60 }
 0x520   :  { %v776_v63 = vsel %vm408_vm2, %v1428_v61, 0.0 }
 0x521   :  { %1429 = vpow2.f32 %v769_v62  ;;  %777 = vadd.xlane.f32.xlu0 %v776_v63 }
 0x524   :  { %v760_v0 = vpop.xlane.xlu2 %759 }
 0x525   :  { %v764_v1 = vsub.f32 %v747_v47, %v760_v0 }
 0x527   :  { %v1430_v2 = vpop.eup %1429  ;;  %v771_v3 = vmul.f32 1.442695, %v764_v1 }
 0x528   :  { %v779_v4 = vsel %vm408_vm2, %v1430_v2, 0.0 }
 0x529   :  { %1431 = vpow2.f32 %v771_v3  ;;  %780 = vadd.xlane.f32.xlu0 %v779_v4 }
 0x52c   :  { %v1392_v5 = vpop.permute.xlu2 %1391 }
 0x52d   :  { %v1393_v6 = vunpack.i.l.bf16 %v1392_v5  ;;  %v1394_v8 = vunpack.i.h.bf16 %v1392_v5 }
 0x52f   :  { %v1432_v7 = vpop.eup %1431  ;;  %829 = vmatpush.msrb.mxu3 %v1393_v6 }
 0x530   :  { %v782_v9 = vsel %vm408_vm2, %v1432_v7, 0.0 }
 0x531   :  { %783 = vadd.xlane.f32.xlu0 %v782_v9  ;;  %830 = vmatpush.msrb.mxu3 %v1394_v8  ;;  %v1406_v8 = vld [vmem:[%s1742_s3] ss:$0 sm:$0xff]  ;;  %s1487_s3 = smov 29  }
 0x532   :  { %s1298_s6 = sld [smem:[%s1881_s0 + %s1487_s3]]  }
 0x534   :  { %v1397_v10 = vpop.permute.xlu1 %1396 }
 0x535   :  { %v1398_v11 = vunpack.i.l.bf16 %v1397_v10  ;;  %v1399_v12 = vunpack.i.h.bf16 %v1397_v10 }
 0x537   :  { %831 = vmatpush.msrb.mxu3 %v1398_v11  ;;  %v1407_v11 = vld [vmem:[%s1755_s7] ss:$0 sm:$0xff]  ;;  %s1488_s7 = smov 34  }
 0x539   :  { %832 = vmatpush.msrb.mxu3 %v1399_v12 }
 0x58c   :  { %v775_v13 = vpop.xlane.xlu0 %774 }
 0x58d   :  { %1433 = vrcp.f32 %v775_v13 }
 0x593   :  { %v1434_v15 = vpop.eup %1433 }
 0x594   :  { %v789_v16 = vmul.f32 %v1434_v15, %v1426_v56  ;;  %v778_v17 = vpop.xlane.xlu0 %777 }
 0x595   :  { %1435 = vrcp.f32 %v778_v17  ;;  %v996_v17 = vld [vmem:[%s1778_s21 + $0x30] sm:$0xff] }
 0x596   :  { %1144 = vst.msk [vmem:[%s1710_s18] sm:$0xff] %vm556_vm3, %v789_v16  ;;  %1326 = vmatmul.msk.f32.vlgmr.msrb.gmra.mxu3 %vm408_vm2, %v789_v16  ;;  %v997_v16 = vld [vmem:[%s1778_s21 + $0x38] sm:$0xff] }
 0x597   :  { %1016 = vmatpush.msrb.mxu1 %v997_v16 }
 0x599   :  { %1017 = vmatpush.msrb.mxu1 %v996_v17 }
 0x59b   :  { %v1436_v20 = vpop.eup %1435 }
 0x59c   :  { %v781_v21 = vpop.xlane.xlu0 %780  ;;  %v1715_v22 = vmul.f32 %v1436_v20, %v1428_v61  ;;  %v995_v20 = vld [vmem:[%s1778_s21 + $0x28] sm:$0xff] }
 0x59d   :  { %1437 = vrcp.f32 %v781_v21  ;;  %1018 = vmatpush.msrb.mxu1 %v995_v20 }
 0x59e   :  { %1327 = vmatmul.msk.f32.gmra.mxu3 %vm408_vm2, %v1715_v22 }
 0x5a3   :  { %v1438_v23 = vpop.eup %1437 }
 0x5a4   :  { %v784_v24 = vpop.xlane.xlu0 %783  ;;  %v791_v25 = vmul.f32 %v1438_v23, %v1430_v2 }
 0x5a5   :  { %1439 = vrcp.f32 %v784_v24  ;;  %v994_v24 = vld [vmem:[%s1778_s21 + $0x20] sm:$0xff] }
 0x5a6   :  { %1328 = vmatmul.msk.f32.gmra.mxu3 %vm408_vm2, %v791_v25  ;;  %1019 = vmatpush.msrb.mxu1 %v994_v24 }
 0x5ab   :  { %v1440_v26 = vpop.eup %1439 }
 0x5ac   :  { %v1720_v27 = vmul.f32 %v1440_v26, %v1432_v7  ;;  %v993_v26 = vld [vmem:[%s1778_s21 + $0x18] sm:$0xff] }
 0x5ad   :  { %1020 = vmatpush.msrb.mxu1 %v993_v26 }
 0x5ae   :  { %1329 = vmatmul.msk.f32.gmra.mxu3 %vm408_vm2, %v1720_v27 }
 0x619   :  { %v834_v32 = vpop.f32.mrf.mxu3 }
 0x621   :  { %v837_v33 = vpop.f32.mrf.mxu3 }
 0x629   :  { %v840_v34 = vpop.f32.mrf.mxu3 }
 0x62a   :  { %848 = vrot.lane.b32.xlu2 %v840_v34, %s1470_s20 }
 0x631   :  { %v843_v35 = vpop.f32.mrf.mxu3 }
 0x632   :  { %850 = vrot.lane.b32.xlu1 %v843_v35, %s1470_s20 }
 0x684   :  { %v849_v37 = vpop.permute.xlu2 %848 }
 0x685   :  { %v854_v39 = vsel %vm168_vm0, %v834_v32, %v849_v37 }
 0x686   :  { %1330 = vmatmul.msk.f32.vlgmr.msra.gmra.mxu1 %vm408_vm2, %v854_v39 }
 0x6a4   :  { %v851_v40 = vpop.permute.xlu1 %850 }
 0x6a5   :  { %v855_v41 = vsel %vm168_vm0, %v837_v33, %v851_v40  ;;  %v992_v40 = vld [vmem:[%s1778_s21 + $0x10] sm:$0xff] }
 0x6a6   :  { %1331 = vmatmul.msk.f32.gmra.mxu1 %vm408_vm2, %v855_v41  ;;  %v991_v41 = vld [vmem:[%s1778_s21 + $0x8] sm:$0xff] }
 0x6a7   :  { %1021 = vmatpush.msrb.mxu1 %v992_v40 }
 0x6a9   :  { %1022 = vmatpush.msrb.mxu1 %v991_v41 }
 0x703   :  { %v887_v43 = vpop.f32.mrf.mxu1 }
 0x704   :  { %v888_v44 = vadd.f32 %v1405_v42, %v887_v43  ;;  %v1408_v43 = vld [vmem:[%s1768_s12] ss:$0 sm:$0xff]  ;;  %s1482_s12 = smov 31  }
 0x705   :  { %s1300_s15 = sld [smem:[%s1881_s0 + %s1482_s12]]   ;;  %s1489_s12 = smov 104  }
 0x706   :  { %v1735_v45 = vadd.f32 %v888_v44, %v1634_v14 }
 0x708   :  { %v897_v46 = vsel %vm408_vm2, %v1735_v45, 0.0 }
 0x709   :  { %898 = vadd.xlane.f32.xlu0 %v897_v46 }
 0x70b   :  { %v1164_v20 = vld [vmem:[%s1300_s15] sm:$0xff] }
 0x723   :  { %v890_v47 = vpop.f32.mrf.mxu1 }
 0x724   :  { %v891_v48 = vadd.f32 %v1405_v42, %v890_v47  ;;  %v990_v42 = vld [vmem:[%s1778_s21] sm:$0xff] }
 0x725   :  { %1023 = vmatpush.msrb.mxu1 %v990_v42 }
 0x726   :  { %v1745_v49 = vadd.f32 %v891_v48, %v1643_v19  ;;  %v1163_v48 = vld [vmem:[%s1299_s1 + $0x18] sm:$0xff] }
 0x727   :  { %1200 = vmatpush.msra.mxu1 %v1163_v48 }
 0x728   :  { %v900_v50 = vsel %vm408_vm2, %v1745_v49, 0.0 }
 0x729   :  { %901 = vadd.xlane.f32.xlu2 %v900_v50  ;;  %v1162_v50 = vld [vmem:[%s1299_s1 + $0x10] sm:$0xff] }
 0x72a   :  { %1201 = vmatpush.msra.mxu1 %v1162_v50 }
 0x77c   :  { %v899_v14 = vpop.xlane.xlu0 %898 }
 0x77d   :  { %v903_v51 = vmul.f32 %v899_v14, %v1656_v38  ;;  %v1161_v14 = vld [vmem:[%s1299_s1 + $0x8] sm:$0xff] }
 0x77e   :  { %1202 = vmatpush.msra.mxu1 %v1161_v14 }
 0x77f   :  { %v905_v52 = vsub.f32 %v1735_v45, %v903_v51  ;;  %v1160_v51 = vld [vmem:[%s1299_s1] sm:$0xff] }
 0x780   :  { %1203 = vmatpush.msra.mxu1 %v1160_v51 }
 0x781   :  { %v907_v53 = vmul.f32 %v905_v52, %v905_v52 }
 0x783   :  { %v909_v54 = vsel %vm408_vm2, %v907_v53, 0.0 }
 0x784   :  { %910 = vadd.xlane.f32.xlu1 %v909_v54 }
 0x79c   :  { %v902_v19 = vpop.xlane.xlu2 %901 }
 0x79d   :  { %v904_v55 = vmul.f32 %v902_v19, %v1656_v38  ;;  %1145 = vrot.lane.b32.xlu1 %v791_v25, %s1465_s8  ;;  %s1289_s8 = sld [smem:[%s1881_s0 + %s1475_s13]]   ;;  %s1490_s13 = smov 35  }
 0x79f   :  { %v1760_v56 = vsub.f32 %v1745_v49, %v904_v55  ;;  %v1409_v55 = vld [vmem:[%s1292_s26] ss:$0 sm:$0xff] }
 0x7a1   :  { %v908_v57 = vmul.f32 %v1760_v56, %v1760_v56 }
 0x7a3   :  { %v912_v58 = vsel %vm408_vm2, %v908_v57, 0.0  ;;  %v954_v59 = vld [vmem:[%s1289_s8 + $0x18] sm:$0xff]  ;;  %v953_v60 = vld [vmem:[%s1289_s8 + $0x10] sm:$0xff]  ;;  %v952_v61 = vld [vmem:[%s1289_s8 + $0x8] sm:$0xff] }
 0x7a4   :  { %913 = vadd.xlane.f32.xlu0 %v912_v58  ;;  %977 = vmatpush.msrb.mxu2 %v954_v59  ;;  %v951_v62 = vld [vmem:[%s1289_s8] sm:$0xff]  ;;  %s1483_s8 = smov 28  }
 0x7a5   :  { %1344 = vmatpush.msra.mxu3 %v954_v59  ;;  %s1838_s20 = sld [smem:[%s1881_s0 + %s1483_s8]]  }
 0x7a6   :  { %978 = vmatpush.msrb.mxu2 %v953_v60  ;;  %s1304_s8 = sld [smem:[%s1881_s0 + %s1490_s13]]  }
 0x7a7   :  { %1345 = vmatpush.msra.mxu3 %v953_v60 }
 0x7a8   :  { %979 = vmatpush.msrb.mxu2 %v952_v61 }
 0x7a9   :  { %1346 = vmatpush.msra.mxu3 %v952_v61 }
 0x7aa   :  { %980 = vmatpush.msrb.mxu2 %v951_v62 }
 0x7ab   :  { %1347 = vmatpush.msra.mxu3 %v951_v62  ;;  %v1114_v17 = vld [vmem:[%s1838_s20 + $0x8] sm:$0xff]  ;;  %v1113_v51 = vld [vmem:[%s1838_s20] sm:$0xff] }
 0x7f7   :  { %v911_v63 = vpop.xlane.xlu1 %910 }
 0x7f8   :  { %v915_v0 = vmul.f32 %v911_v63, %v1656_v38 }
 0x7fa   :  { %v917_v1 = vadd.f32 1e-05, %v915_v0 }
 0x7fc   :  { %1441 = vrsqrt.f32 %v917_v1  ;;  %vm925_vm4 = vweird.f32 %v917_v1 }
 0x802   :  { %v1442_v2 = vpop.eup %1441 }
 0x803   :  { %v920_v3 = vmul.f32 %v1442_v2, %v917_v1  ;;  %vm926_vm15 = vweird.f32 %v1442_v2 }
 0x804   :  { %vm927_vm5 = vmor %vm925_vm4, %vm926_vm15 }
 0x805   :  { %v921_v4 = vmul.f32 %v1442_v2, %v920_v3 }
 0x807   :  { %v922_v5 = vmul.f32 0.5, %v921_v4 }
 0x809   :  { %v923_v6 = vsub.f32 1.5, %v922_v5 }
 0x80b   :  { %v924_v7 = vmul.f32 %v1442_v2, %v923_v6  ;;  %v1401_v6 = vld [vmem:[%s1641_s19] ss:$0 sm:$0xff] }
 0x80d   :  { %v928_v9 = vsel %vm927_vm5, %v1442_v2, %v924_v7  ;;  %v481_v7 = vadd.f32 %v1401_v6, %v1683_v18 }
 0x80e   :  { %v939_v10 = vmul.f32 %v928_v9, %v905_v52 }
 0x80f   :  { %v1146_v12 = vpop.permute.xlu1 %1145 }
 0x810   :  { %v944_v13 = vmul.f32 %v1406_v8, %v939_v10  ;;  %1338 = vst.msk [vmem:[%s1710_s18 + $0x8] sm:$0xff] %vm556_vm3, %v1146_v12  ;;  %v1166_v10 = vld [vmem:[%s1300_s15 + $0x10] sm:$0xff] }
 0x811   :  { %v1115_v12 = vld [vmem:[%s1838_s20 + $0x10] sm:$0xff] }
 0x812   :  { %v949_v15 = vadd.f32 %v1407_v11, %v944_v13 }
 0x814   :  { %1332 = vmatmul.msk.f32.vlgmr.msrb.gmra.mxu2 %vm408_vm2, %v949_v15  ;;  %v1165_v15 = vld [vmem:[%s1300_s15 + $0x8] sm:$0xff] }
 0x817   :  { %v914_v21 = vpop.xlane.xlu0 %913 }
 0x818   :  { %v916_v23 = vmul.f32 %v914_v21, %v1656_v38 }
 0x81a   :  { %v918_v25 = vadd.f32 1e-05, %v916_v23 }
 0x81c   :  { %1443 = vrsqrt.f32 %v918_v25  ;;  %vm935_vm7 = vweird.f32 %v918_v25 }
 0x822   :  { %v1444_v28 = vpop.eup %1443 }
 0x823   :  { %v930_v29 = vmul.f32 %v1444_v28, %v918_v25  ;;  %vm936_vm6 = vweird.f32 %v1444_v28 }
 0x824   :  { %vm937_vm8 = vmor %vm935_vm7, %vm936_vm6 }
 0x825   :  { %v931_v30 = vmul.f32 %v1444_v28, %v930_v29 }
 0x827   :  { %v932_v32 = vmul.f32 0.5, %v931_v30 }
 0x829   :  { %v933_v33 = vsub.f32 1.5, %v932_v32  ;;  %v1410_v32 = vld [vmem:[%s1818_s5] ss:$0 sm:$0xff] }
 0x82b   :  { %v934_v34 = vmul.f32 %v1444_v28, %v933_v33 }
 0x82d   :  { %v938_v35 = vsel %vm937_vm8, %v1444_v28, %v934_v34 }
 0x82e   :  { %v940_v36 = vmul.f32 %v938_v35, %v1760_v56 }
 0x830   :  { %v945_v37 = vmul.f32 %v1406_v8, %v940_v36  ;;  %v1411_v36 = vld [vmem:[%s1825_s10] ss:$0 sm:$0xff] }
 0x832   :  { %v950_v39 = vadd.f32 %v1407_v11, %v945_v37  ;;  %v1116_v11 = vld [vmem:[%s1838_s20 + $0x18] sm:$0xff] }
 0x833   :  { %1136 = vmatpush.msrb.mxu3 %v1116_v11 }
 0x834   :  { %1333 = vmatmul.msk.f32.vlgmr.msra.gmra.mxu3 %vm408_vm2, %v950_v39 }
 0x835   :  { %1137 = vmatpush.msrb.mxu3 %v1115_v12 }
 0x837   :  { %1138 = vmatpush.msrb.mxu3 %v1114_v17 }
 0x839   :  { %1139 = vmatpush.msrb.mxu3 %v1113_v51 }
 0x897   :  { %v982_v44 = vpop.f32.mrf.mxu2 }
 0x898   :  { %v983_v46 = vadd.f32 %v1408_v43, %v982_v44 }
 0x89a   :  { %v988_v47 = vmax.f32 %v983_v46, 0.0 }
 0x89c   :  { %1334 = vmatmul.msk.f32.vlgmr.msrb.gmra.mxu1 %vm509_vm1, %v988_v47 }
 0x8b7   :  { %v985_v52 = vpop.f32.mrf.mxu3 }
 0x8b8   :  { %v986_v53 = vadd.f32 %v1408_v43, %v985_v52  ;;  %v1221_v52 = vld [vmem:[%s1302_s2 + $0x38] sm:$0xff] }
 0x8ba   :  { %v989_v54 = vmax.f32 %v986_v53, 0.0  ;;  %v1220_v53 = vld [vmem:[%s1302_s2 + $0x30] sm:$0xff] }
 0x8bc   :  { %1335 = vmatmul.msk.f32.gmra.mxu1 %vm509_vm1, %v989_v54  ;;  %v1219_v54 = vld [vmem:[%s1302_s2 + $0x28] sm:$0xff] }
 0x8c4   :  { %1342 = vmatmul.msk.f32.vlgmr.msra.gmra.mxu1 %vm408_vm2, %v1647_v31 }
 0x919   :  { %v1025_v19 = vpop.f32.mrf.mxu1 }
 0x91a   :  { %v1026_v59 = vadd.f32 %v1409_v55, %v1025_v19  ;;  %v1218_v19 = vld [vmem:[%s1302_s2 + $0x20] sm:$0xff] }
 0x91c   :  { %v1031_v61 = vadd.f32 %v1026_v59, %v1735_v45  ;;  %v1214_v59 = vld [vmem:[%s1302_s2] sm:$0xff] }
 0x91e   :  { %v1035_v62 = vsel %vm408_vm2, %v1031_v61, 0.0 }
 0x939   :  { %v1028_v56 = vpop.f32.mrf.mxu1 }
 0x93a   :  { %v1029_v57 = vadd.f32 %v1409_v55, %v1028_v56  ;;  %v1217_v56 = vld [vmem:[%s1302_s2 + $0x18] sm:$0xff] }
 0x93c   :  { %v1032_v58 = vadd.f32 %v1029_v57, %v1745_v49  ;;  %v1216_v57 = vld [vmem:[%s1302_s2 + $0x10] sm:$0xff] }
 0x93e   :  { %v1038_v60 = vsel %vm408_vm2, %v1032_v58, 0.0 }
 0x93f   :  { %1039 = vadd.xlane.f32.xlu0 %v1038_v60  ;;  %v1412_v60 = vld [vmem:[%s1301_s27] ss:$0 sm:$0xff] }
 0x947   :  { %1036 = vadd.xlane.f32.xlu0 %v1035_v62 }
 0x9b2   :  { %v1040_v63 = vpop.xlane.xlu0 %1039 }
 0x9b3   :  { %v1042_v0 = vmul.f32 %v1040_v63, %v1656_v38 }
 0x9b5   :  { %v1044_v31 = vsub.f32 %v1032_v58, %v1042_v0  ;;  %v1215_v58 = vld [vmem:[%s1302_s2 + $0x8] sm:$0xff] }
 0x9b7   :  { %v1046_v1 = vmul.f32 %v1044_v31, %v1044_v31 }
 0x9b9   :  { %v1050_v2 = vsel %vm408_vm2, %v1046_v1, 0.0 }
 0x9ba   :  { %1051 = vadd.xlane.f32.xlu0 %v1050_v2  ;;  %v1037_v3 = vpop.xlane.xlu0 %1036 }
 0x9bb   :  { %v1041_v49 = vmul.f32 %v1037_v3, %v1656_v38 }
 0x9bd   :  { %v1813_v4 = vsub.f32 %v1031_v61, %v1041_v49  ;;  %v1205_v61 = vpop.f32.mrf.mxu1 }
 0x9bf   :  { %v1045_v45 = vmul.f32 %v1813_v4, %v1813_v4 }
 0x9c1   :  { %v1047_v5 = vsel %vm408_vm2, %v1045_v45, 0.0 }
 0x9c2   :  { %1048 = vadd.xlane.f32.xlu0 %v1047_v5 }
 0x9d6   :  { %1254 = vrot.lane.b32.xlu0 %v481_v7, %s1453_s22  ;;  %s1484_s22 = smov 26  }
 0x9d7   :  { %s1295_s23 = sld [smem:[%s1881_s0 + %s1484_s22]]  }
 0x9dd   :  { %v1089_v14 = vld [vmem:[%s1295_s23] sm:$0x3] }
 0x9de   :  { %1150 = vrot.lane.b32.xlu0 %v1715_v22, %s1481_s11  ;;  %v1167_v22 = vld [vmem:[%s1300_s15 + $0x18] sm:$0xff]  ;;  %s1303_s11 = sld [smem:[%s1881_s0 + %s1488_s7]]  }
 0x9df   :  { %1180 = vmatpush.msrb.mxu0 %v1167_v22 }
 0x9e1   :  { %1181 = vmatpush.msrb.mxu0 %v1166_v10 }
 0x9e3   :  { %1182 = vmatpush.msrb.mxu0 %v1165_v15 }
 0x9e4   :  { %v1414_v45 = vld [vmem:[%s1303_s11] ss:$0 sm:$0xff] }
 0x9e5   :  { %1183 = vmatpush.msrb.mxu0 %v1164_v20 }
 0xa2d   :  { %v1052_v18 = vpop.xlane.xlu0 %1051 }
 0xa2e   :  { %v1054_v8 = vmul.f32 %v1052_v18, %v1656_v38 }
 0xa30   :  { %v1056_v9 = vadd.f32 1e-05, %v1054_v8 }
 0xa32   :  { %1445 = vrsqrt.f32 %v1056_v9  ;;  %vm1073_vm10 = vweird.f32 %v1056_v9 }
 0xa35   :  { %v1049_v13 = vpop.xlane.xlu0 %1048 }
 0xa36   :  { %v1053_v16 = vmul.f32 %v1049_v13, %v1656_v38 }
 0xa38   :  { %v1446_v21 = vpop.eup %1445  ;;  %v1055_v23 = vadd.f32 1e-05, %v1053_v16 }
 0xa39   :  { %v1068_v24 = vmul.f32 %v1446_v21, %v1056_v9  ;;  %vm1074_vm9 = vweird.f32 %v1446_v21 }
 0xa3a   :  { %1447 = vrsqrt.f32 %v1055_v23  ;;  %vm1075_vm11 = vmor %vm1073_vm10, %vm1074_vm9  ;;  %vm1063_vm13 = vweird.f32 %v1055_v23 }
 0xa3b   :  { %v1069_v25 = vmul.f32 %v1446_v21, %v1068_v24 }
 0xa3d   :  { %v1070_v26 = vmul.f32 0.5, %v1069_v25 }
 0xa3f   :  { %v1071_v28 = vsub.f32 1.5, %v1070_v26 }
 0xa40   :  { %v1448_v29 = vpop.eup %1447 }
 0xa41   :  { %v1072_v30 = vmul.f32 %v1446_v21, %v1071_v28  ;;  %v1058_v38 = vmul.f32 %v1448_v29, %v1055_v23  ;;  %vm1064_vm12 = vweird.f32 %v1448_v29 }
 0xa42   :  { %vm1065_vm14 = vmor %vm1063_vm13, %vm1064_vm12 }
 0xa43   :  { %v1076_v33 = vsel %vm1075_vm11, %v1446_v21, %v1072_v30  ;;  %v1059_v34 = vmul.f32 %v1448_v29, %v1058_v38 }
 0xa44   :  { %v1078_v35 = vmul.f32 %v1076_v33, %v1044_v31  ;;  %v1413_v31 = vld [vmem:[%s1298_s6] ss:$0 sm:$0xff] }
 0xa45   :  { %v1060_v37 = vmul.f32 0.5, %v1059_v34 }
 0xa46   :  { %v1083_v39 = vmul.f32 %v1410_v32, %v1078_v35 }
 0xa47   :  { %v1061_v40 = vsub.f32 1.5, %v1060_v37 }
 0xa48   :  { %v1847_v41 = vpop.permute.xlu0 %1254  ;;  %v1088_v42 = vadd.f32 %v1411_v36, %v1083_v39 }
 0xa49   :  { %v1062_v43 = vmul.f32 %v1448_v29, %v1061_v40 }
 0xa4a   :  { %1107 = vmatpush.msra.mxu2 %v1088_v42 }
 0xa4b   :  { %v1066_v44 = vsel %vm1065_vm14, %v1448_v29, %v1062_v43 }
 0xa4c   :  { %v1077_v46 = vmul.f32 %v1066_v44, %v1813_v4 }
 0xa4e   :  { %v1082_v47 = vmul.f32 %v1410_v32, %v1077_v46 }
 0xa50   :  { %v1151_v48 = vpop.permute.xlu0 %1150  ;;  %v1087_v50 = vadd.f32 %v1411_v36, %v1082_v47 }
 0xa51   :  { %1339 = vst.msk [vmem:[%s1710_s18 + $0x10] sm:$0xff] %vm556_vm3, %v1151_v48 }
 0xa52   :  { %1108 = vmatpush.msra.mxu2 %v1087_v50 }
 0xa53   :  { %1336 = vmatmul.msk.f32.vlgmr.msra.gmra.mxu2 %vm168_vm0, %v1089_v14  ;;  %vm1257_vm0 = vcmask 31744  }
 0xa54   :  { %1237 = vmatpush.msrb.mxu2 %v1221_v52 }
 0xa56   :  { %1238 = vmatpush.msrb.mxu2 %v1220_v53 }
 0xa58   :  { %1239 = vmatpush.msrb.mxu2 %v1219_v54 }
 0xa5a   :  { %1240 = vmatpush.msrb.mxu2 %v1218_v19 }
 0xa5c   :  { %1241 = vmatpush.msrb.mxu2 %v1217_v56 }
 0xa5e   :  { %1242 = vmatpush.msrb.mxu2 %v1216_v57 }
 0xa60   :  { %1243 = vmatpush.msrb.mxu2 %v1215_v58 }
 0xa62   :  { %1244 = vmatpush.msrb.mxu2 %v1214_v59 }
 0xad6   :  { %v1110_v55 = vpop.f32.mrf.mxu2 }
 0xad7   :  { %1337 = vmatmul.msk.f32.vlgmr.msrb.gmra.mxu3 %vm408_vm2, %v1110_v55  ;;  %1341 = vmatmul.msk.f32.vlgmr.msrb.gmra.mxu0 %vm408_vm2, %v1110_v55  ;;  %vm1260_vm2 = vcmask 91136  }
 0xb54   :  { %v1185_v62 = vpop.f32.mrf.mxu0 }
 0xb55   :  { %v1206_v63 = vadd.f32 %v1205_v61, %v1185_v62 }
 0xb57   :  { %v1212_v0 = vadd.f32 %v1412_v60, %v1206_v63 }
 0xb59   :  { %v1213_v1 = vmax.f32 %v1212_v0, 0.0 }
 0xb5a   :  { %v1141_v2 = vpop.f32.mrf.mxu3 }
 0xb5b   :  { %v1142_v3 = vadd.f32 %v1413_v31, %v1141_v2  ;;  %1343 = vmatmul.msk.f32.vlgmr.msrb.gmra.mxu2 %vm509_vm1, %v1213_v1 }
 0xb5d   :  { %1250 = vrot.lane.b32.xlu2 %v1142_v3, %s1455_s30 }
 0xb65   :  { %1155 = vrot.lane.b32.xlu2 %v1720_v27, %s1489_s12 }
 0xbb7   :  { %v1251_v49 = vpop.permute.xlu2 %1250 }
 0xbbf   :  { %v1156_v4 = vpop.permute.xlu2 %1155 }
 0xbc0   :  { %1340 = vst.msk [vmem:[%s1710_s18 + $0x18] sm:$0xff] %vm556_vm3, %v1156_v4 }
 0xbde   :  { %v1246_v5 = vpop.f32.mrf.mxu2 }
 0xbdf   :  { %v1247_v6 = vadd.f32 %v1414_v45, %v1246_v5 }
 0xbe1   :  { %v1258_v7 = vsel %vm1257_vm0, %v1247_v6, %v1251_v49 }
 0xbe2   :  { %v1259_v18 = vsel %vm556_vm3, %v1258_v7, %v1847_v41 }
 0xbe3   :  { %1261 = vst.msk [vmem:[%s1304_s8] sm:$0x3] %vm1260_vm2, %v1259_v18 }

</bundles_post_ra>
